<compile_context>
chip_gen: v7x
topology: tpu7x:2x2x1
jax: 0.10.0
libtpu: 0.0.40
codegen_flags: <defaults>
</compile_context>

<pallas_src>
import functools
import math

import jax
import jax.numpy as jnp
import numpy as np
from jax.experimental import pallas as pl
from jax.experimental.pallas import tpu as pltpu

# ----------------------------- configuration --------------------------------
X_CH = 4
POS_CH = 4
EDGE_DIM = 4
OUT_CH = 2 * EDGE_DIM          # the module requires out_ch == 2 * edge_dim
HEADS = 4
DH = OUT_CH // HEADS
N_LAYERS = 3
MAX_NODE = 8                   # N
TEMB_DIM = 16
B = 2


# ------------------------------- fused kernel --------------------------------
def _fused_kernel(x_deg_ref, x_pos_ref, edge_ref, temb_ref,
                  wt_ref, bt_ref,
                  wqkvs_ref, bqkvs_ref, we_ref, be_ref,
                  wpp_ref, wpn_ref, bp_ref, wec_ref, bec_ref,
                  wel1_ref, wel2_ref, bel_ref,
                  sel_ref, exp_ref, repi_ref, repj_ref, jsum_ref,
                  erep_ref, nrep_ref,
                  out_ref,
                  *, apply_temb, n_layers, heads):
    """Whole pos_gnn forward for the full batch, everything in VMEM.

    Layouts (channels-first):
      node tensors : [channels, B*N]
      edge tensors : [channels, B*N*N]   (lane index = b*N*N + i*N + j)
    """
    f32 = jnp.float32
    c = x_deg_ref.shape[0]               # OUT_CH
    two_ed = edge_ref.shape[0]           # 2 * edge_dim
    dh = c // heads

    h = x_deg_ref[...]                   # [C, B*N]  (zero padded beyond x_ch)
    pos = x_pos_ref[...]                 # [P, B*N]
    dense_edge = edge_ref[...]           # [2ed, B*N*N]

    SEL = sel_ref[...]                   # [C, H]    head -> channel expander
    EXP = exp_ref[...]                   # [H, C]    per-head segmented channel sum
    REPI = repi_ref[...]                 # [B*N, B*N*N]  (b,i) -> (b,i,j)
    REPJ = repj_ref[...]                 # [B*N, B*N*N]  (b,j) -> (b,i,j)
    JSUM = jsum_ref[...]                 # [B*N*N, B*N]  sum over j
    REPSUM = REPI + REPJ                 # h_i + h_j broadcaster

    # ---- timestep-embedding projections (one fused matmul) ----
    if apply_temb:
        te = jax.nn.silu(temb_ref[...])                               # [T, B]
        tp = (jnp.dot(wt_ref[...], te, preferred_element_type=f32)
              + bt_ref[...])                                          # [2ed+C+P, B]
        de = tp[0:two_ed, :]                                          # [2ed, B]
        dn0 = tp[two_ed:two_ed + c, :]                                # [C, B]
        dn1 = tp[two_ed + c:, :]                                      # [P, B]
        dense_edge = dense_edge + jnp.dot(de, erep_ref[...],
                                          preferred_element_type=f32)
        h = h + jnp.dot(dn0, nrep_ref[...], preferred_element_type=f32)
        pos = pos + jnp.dot(dn1, nrep_ref[...], preferred_element_type=f32)

    ori_edge = dense_edge
    inv_sqrt_dh = 1.0 / math.sqrt(dh)
    inv_sqrt2 = 1.0 / math.sqrt(2.0)
    inv_heads = 1.0 / heads

    for l in range(n_layers):                                         # static unroll
        # fused Q | K | V | skip projection: one [4C, C] x [C, B*N] matmul
        proj = (jnp.dot(wqkvs_ref[l], h, preferred_element_type=f32)
                + bqkvs_ref[l])                                       # [4C, B*N]
        q = proj[0 * c:1 * c, :]
        k = proj[1 * c:2 * c, :]
        v = proj[2 * c:3 * c, :]
        s = proj[3 * c:4 * c, :]

        e = (jnp.dot(we_ref[l], dense_edge, preferred_element_type=f32)
             + be_ref[l])                                             # [C, B*N*N]

        # broadcast node features over edge pairs with replication matmuls
        q_e = jnp.dot(q, REPI, preferred_element_type=f32)            # [C, B*N*N]
        k_e = jnp.dot(k, REPJ, preferred_element_type=f32)
        v_e = jnp.dot(v, REPJ, preferred_element_type=f32)

        # all-head scores: segmented per-head channel sum via one EXP matmul
        scores = jnp.dot(EXP, q_e * (k_e + e),
                         preferred_element_type=f32) * inv_sqrt_dh    # [H, B*N*N]

        # softmax over j: one shared row max, sum / broadcast via matmuls
        m = jnp.max(scores, axis=-1, keepdims=True)                   # [H, 1]
        p = jnp.exp(scores - m)
        ssum = jnp.dot(p, JSUM, preferred_element_type=f32)           # [H, B*N]
        attn = p * jnp.dot(1.0 / ssum, REPI, preferred_element_type=f32)

        # head output: attn @ (v + e) with segmented head expansion, + skip
        attn_c = jnp.dot(SEL, attn, preferred_element_type=f32)       # [C, B*N*N]
        h = (jnp.dot(attn_c * (v_e + e), JSUM, preferred_element_type=f32)
             + s)                                                     # [C, B*N]
        # Dropout_0: identity (eval mode)

        # positional feature update (assumed dense graph_layer semantics)
        attn_mean = jnp.sum(attn, axis=0, keepdims=True) * inv_heads  # [1, B*N*N]
        pos_e = jnp.dot(pos, REPJ, preferred_element_type=f32)        # [P, B*N*N]
        agg = jnp.dot(attn_mean * pos_e, JSUM,
                      preferred_element_type=f32)                     # [P, B*N]
        pos = jnp.tanh(jnp.dot(wpp_ref[l], pos, preferred_element_type=f32)
                       + jnp.dot(wpn_ref[l], agg, preferred_element_type=f32)
                       + bp_ref[l])

        # dense_edge = (dense_edge + act(edge_conv(h_i + h_j))) / sqrt(2)
        cur = jnp.dot(h, REPSUM, preferred_element_type=f32)          # [C, B*N*N]
        eo = jax.nn.silu(jnp.dot(wec_ref[l], cur, preferred_element_type=f32)
                         + bec_ref[l])                                # [2ed, B*N*N]
        dense_edge = (dense_edge + eo) * inv_sqrt2

    # final edge_layer(cat([ori_edge_attr, dense_edge], -1)), channels-first
    y = (jnp.dot(wel1_ref[...], ori_edge, preferred_element_type=f32)
         + jnp.dot(wel2_ref[...], dense_edge, preferred_element_type=f32)
         + bel_ref[...])                                              # [ed, B*N*N]
    out_ref[...] = y.astype(out_ref.dtype)          # unmasked full-128-lane store


# --------------------------- pallas_call wrapper ------------------------------
def _full_spec(shape):
    nd = len(shape)
    return pl.BlockSpec(tuple(int(d) for d in shape), lambda i, nd=nd: (0,) * nd)


def _selector_constants(b, n, c, heads):
    """Static 0/1 replication / selection matrices (trace-time constants)."""
    bn, bnn, dh = b * n, b * n * n, c // heads
    m = np.arange(bnn)
    r = np.arange(bn)
    repi = (m[None, :] // n == r[:, None]).astype(np.float32)             # [BN, BNN]
    repj = ((m[None, :] // (n * n) == r[:, None] // n)
            & (m[None, :] % n == r[:, None] % n)).astype(np.float32)      # [BN, BNN]
    jsum = np.ascontiguousarray(repi.T)                                   # [BNN, BN]
    sel = (np.arange(c)[:, None] // dh
           == np.arange(heads)[None, :]).astype(np.float32)               # [C, H]
    expm = np.ascontiguousarray(sel.T)                                    # [H, C]
    erep = (m[None, :] // (n * n)
            == np.arange(b)[:, None]).astype(np.float32)                  # [B, BNN]
    nrep = (r[None, :] // n == np.arange(b)[:, None]).astype(np.float32)  # [B, BN]
    return tuple(jnp.asarray(a) for a in (sel, expm, repi, repj, jsum, erep, nrep))


def pos_gnn_forward(params, x_degree, x_pos, edge_index, dense_ori, dense_spd,
                    dense_index, temb=None):
    del edge_index, dense_index   # dense attention implementation: unused
    b, n, _, ed = dense_ori.shape
    x_ch = x_degree.shape[-1]
    c = OUT_CH
    bn, bnn = b * n, b * n * n

    # channels-first layout plumbing (tiny one-off XLA transposes outside
    # the kernel so every in-kernel edge slab is a full 128-lane row).
    x_deg_cf = jnp.zeros((c, bn), jnp.float32)
    x_deg_cf = x_deg_cf.at[:x_ch, :].set(x_degree.astype(jnp.float32).T)
    x_pos_cf = x_pos.astype(jnp.float32).T                               # [P, BN]
    edge_cat = jnp.concatenate([dense_ori, dense_spd], axis=-1)          # [B,N,N,2ed]
    edge_cf = jnp.transpose(edge_cat, (3, 0, 1, 2)).reshape(2 * ed, bnn)
    edge_cf = edge_cf.astype(jnp.float32)

    apply_temb = temb is not None
    temb_cf = (temb.astype(jnp.float32).T if apply_temb
               else jnp.zeros((TEMB_DIM, b), jnp.float32))                # [T, B]

    sel, expm, repi, repj, jsum, erep, nrep = _selector_constants(b, n, c, HEADS)

    kernel = functools.partial(_fused_kernel, apply_temb=apply_temb,
                               n_layers=N_LAYERS, heads=HEADS)

    operands = (x_deg_cf, x_pos_cf, edge_cf, temb_cf,
                params["w_temb"], params["b_temb"],
                params["w_qkvs"], params["b_qkvs"],
                params["w_e"], params["b_e"],
                params["w_pp"], params["w_pn"], params["b_p"],
                params["w_ec"], params["b_ec"],
                params["w_el1"], params["w_el2"], params["b_el"],
                sel, expm, repi, repj, jsum, erep, nrep)

    out = pl.pallas_call(
        kernel,
        out_shape=jax.ShapeDtypeStruct((ed, bnn), jnp.float32),
        grid=(1,),   # single batch-fused step (see TODO for v7x dual-TC split)
        in_specs=[_full_spec(o.shape) for o in operands],
        out_specs=_full_spec((ed, bnn)),
        compiler_params=pltpu.CompilerParams(
            dimension_semantics=("arbitrary",)),
    )(*operands)

    # [ed, B*N*N] -> [B, ed, N, N]: ~2 KB XLA transpose outside the kernel.
    return jnp.transpose(out.reshape(ed, b, n, n), (1, 0, 2, 3))


# ------------------------------ parameters ------------------------------------
def init_params(key):
    keys = iter(jax.random.split(key, 64))

    def w(shape, scale=0.2):
        return scale * jax.random.normal(next(keys), shape, dtype=jnp.float32)

    C, ed, P, T, L = OUT_CH, EDGE_DIM, POS_CH, TEMB_DIM, N_LAYERS

    # fused temb projection, channels-first rows = [edge0 | edge1 | node0(pad C) | node1]
    w_temb = jnp.concatenate(
        [w((2 * ed, T)),
         jnp.concatenate([w((X_CH, T)), jnp.zeros((C - X_CH, T), jnp.float32)], 0),
         w((P, T))], axis=0)                                          # [2ed+C+P, T]
    b_temb = jnp.concatenate(
        [w((2 * ed, 1), 0.05),
         jnp.concatenate([w((X_CH, 1), 0.05), jnp.zeros((C - X_CH, 1), jnp.float32)], 0),
         w((P, 1), 0.05)], axis=0)                                    # [2ed+C+P, 1]

    w_qkvs, b_qkvs, w_e, b_e = [], [], [], []
    w_pp, w_pn, b_p, w_ec, b_ec = [], [], [], [], []
    for i in range(L):
        cin = X_CH if i == 0 else C
        # fused [Q;K;V;skip] weight, channels-first [4C, C]; input columns
        # beyond cin are zero (they meet the zero-padded rows of h).
        wl = jnp.zeros((4 * C, C), jnp.float32)
        wl = wl.at[:, :cin].set(w((4 * C, cin)))
        w_qkvs.append(wl)
        b_qkvs.append(jnp.concatenate(
            [w((3 * C, 1), 0.05), jnp.zeros((C, 1), jnp.float32)], 0))  # skip: no bias
        w_e.append(w((C, 2 * ed)))
        b_e.append(w((C, 1), 0.05))
        w_pp.append(w((P, P)))
        w_pn.append(w((P, P)))
        b_p.append(w((P, 1), 0.05))
        w_ec.append(w((2 * ed, C)))
        b_ec.append(w((2 * ed, 1), 0.05))

    return {
        "w_temb": w_temb, "b_temb": b_temb,
        "w_qkvs": jnp.stack(w_qkvs), "b_qkvs": jnp.stack(b_qkvs),
        "w_e": jnp.stack(w_e), "b_e": jnp.stack(b_e),
        "w_pp": jnp.stack(w_pp), "w_pn": jnp.stack(w_pn), "b_p": jnp.stack(b_p),
        "w_ec": jnp.stack(w_ec), "b_ec": jnp.stack(b_ec),
        "w_el1": w((ed, 2 * ed)), "w_el2": w((ed, C)), "b_el": w((ed, 1), 0.05),
    }


# --------------------------------- main ----------------------------------------
if __name__ == "__main__":
    key = jax.random.PRNGKey(0)
    k_params, k_deg, k_pos, k_ori, k_spd, k_temb = jax.random.split(key, 6)

    params = init_params(k_params)

    N = MAX_NODE
    x_degree = jax.random.normal(k_deg, (B * N, X_CH), dtype=jnp.float32)
    x_pos = jax.random.normal(k_pos, (B * N, POS_CH), dtype=jnp.float32)
    dense_ori = jax.random.normal(k_ori, (B, N, N, EDGE_DIM), dtype=jnp.float32)
    dense_spd = jax.random.normal(k_spd, (B, N, N, EDGE_DIM), dtype=jnp.float32)
    temb = jax.random.normal(k_temb, (B, TEMB_DIM), dtype=jnp.float32)

    # fully-connected graph bookkeeping (kept for interface parity; unused)
    ii = jnp.arange(B * N * N, dtype=jnp.int32)
    edge_index = jnp.stack([ii // N, ii % N]).astype(jnp.int32)   # [2, B*N*N]
    dense_index = jnp.ones((B, N, N), dtype=bool)

    fwd = jax.jit(pos_gnn_forward)
    out = fwd(params, x_degree, x_pos, edge_index,
              dense_ori, dense_spd, dense_index, temb)
    out = jax.block_until_ready(out)

    assert out.shape == (B, EDGE_DIM, N, N), out.shape
    assert bool(jnp.all(jnp.isfinite(out)))
    print("KERNEL_OK")
</pallas_src>

<mosaic_0001>
module attributes {stable_mosaic.version = 11 : i64} {
  func.func @_fused_kernel(%arg0: i32, %arg1: memref<8x16xf32, #tpu.memory_space<vmem>>, %arg2: memref<4x16xf32, #tpu.memory_space<vmem>>, %arg3: memref<8x128xf32, #tpu.memory_space<vmem>>, %arg4: memref<16x2xf32, #tpu.memory_space<vmem>>, %arg5: memref<20x16xf32, #tpu.memory_space<vmem>>, %arg6: memref<20x1xf32, #tpu.memory_space<vmem>>, %arg7: memref<3x32x8xf32, #tpu.memory_space<vmem>>, %arg8: memref<3x32x1xf32, #tpu.memory_space<vmem>>, %arg9: memref<3x8x8xf32, #tpu.memory_space<vmem>>, %arg10: memref<3x8x1xf32, #tpu.memory_space<vmem>>, %arg11: memref<3x4x4xf32, #tpu.memory_space<vmem>>, %arg12: memref<3x4x4xf32, #tpu.memory_space<vmem>>, %arg13: memref<3x4x1xf32, #tpu.memory_space<vmem>>, %arg14: memref<3x8x8xf32, #tpu.memory_space<vmem>>, %arg15: memref<3x8x1xf32, #tpu.memory_space<vmem>>, %arg16: memref<4x8xf32, #tpu.memory_space<vmem>>, %arg17: memref<4x8xf32, #tpu.memory_space<vmem>>, %arg18: memref<4x1xf32, #tpu.memory_space<vmem>>, %arg19: memref<8x4xf32, #tpu.memory_space<vmem>>, %arg20: memref<4x8xf32, #tpu.memory_space<vmem>>, %arg21: memref<16x128xf32, #tpu.memory_space<vmem>>, %arg22: memref<16x128xf32, #tpu.memory_space<vmem>>, %arg23: memref<128x16xf32, #tpu.memory_space<vmem>>, %arg24: memref<2x128xf32, #tpu.memory_space<vmem>>, %arg25: memref<2x16xf32, #tpu.memory_space<vmem>>, %arg26: memref<4x128xf32, #tpu.memory_space<vmem>>) attributes {dimension_semantics = [#tpu.dimension_semantics<arbitrary>], iteration_bounds = array<i64: 1>, scalar_prefetch = 0 : i64, scratch_operands = 0 : i64, tpu.core_type = #tpu.core_type<tc>, window_params = [{pipeline_mode = #tpu.pipeline_mode<synchronous>, transform_indices = @transform_0, window_bounds = array<i64: 8, 16>}, {pipeline_mode = #tpu.pipeline_mode<synchronous>, transform_indices = @transform_1, window_bounds = array<i64: 4, 16>}, {pipeline_mode = #tpu.pipeline_mode<synchronous>, transform_indices = @transform_2, window_bounds = array<i64: 8, 128>}, {pipeline_mode = #tpu.pipeline_mode<synchronous>, transform_indices = @transform_3, window_bounds = array<i64: 16, 2>}, {pipeline_mode = #tpu.pipeline_mode<synchronous>, transform_indices = @transform_4, window_bounds = array<i64: 20, 16>}, {pipeline_mode = #tpu.pipeline_mode<synchronous>, transform_indices = @transform_5, window_bounds = array<i64: 20, 1>}, {pipeline_mode = #tpu.pipeline_mode<synchronous>, transform_indices = @transform_6, window_bounds = array<i64: 3, 32, 8>}, {pipeline_mode = #tpu.pipeline_mode<synchronous>, transform_indices = @transform_7, window_bounds = array<i64: 3, 32, 1>}, {pipeline_mode = #tpu.pipeline_mode<synchronous>, transform_indices = @transform_8, window_bounds = array<i64: 3, 8, 8>}, {pipeline_mode = #tpu.pipeline_mode<synchronous>, transform_indices = @transform_9, window_bounds = array<i64: 3, 8, 1>}, {pipeline_mode = #tpu.pipeline_mode<synchronous>, transform_indices = @transform_10, window_bounds = array<i64: 3, 4, 4>}, {pipeline_mode = #tpu.pipeline_mode<synchronous>, transform_indices = @transform_11, window_bounds = array<i64: 3, 4, 4>}, {pipeline_mode = #tpu.pipeline_mode<synchronous>, transform_indices = @transform_12, window_bounds = array<i64: 3, 4, 1>}, {pipeline_mode = #tpu.pipeline_mode<synchronous>, transform_indices = @transform_13, window_bounds = array<i64: 3, 8, 8>}, {pipeline_mode = #tpu.pipeline_mode<synchronous>, transform_indices = @transform_14, window_bounds = array<i64: 3, 8, 1>}, {pipeline_mode = #tpu.pipeline_mode<synchronous>, transform_indices = @transform_15, window_bounds = array<i64: 4, 8>}, {pipeline_mode = #tpu.pipeline_mode<synchronous>, transform_indices = @transform_16, window_bounds = array<i64: 4, 8>}, {pipeline_mode = #tpu.pipeline_mode<synchronous>, transform_indices = @transform_17, window_bounds = array<i64: 4, 1>}, {pipeline_mode = #tpu.pipeline_mode<synchronous>, transform_indices = @transform_18, window_bounds = array<i64: 8, 4>}, {pipeline_mode = #tpu.pipeline_mode<synchronous>, transform_indices = @transform_19, window_bounds = array<i64: 4, 8>}, {pipeline_mode = #tpu.pipeline_mode<synchronous>, transform_indices = @transform_20, window_bounds = array<i64: 16, 128>}, {pipeline_mode = #tpu.pipeline_mode<synchronous>, transform_indices = @transform_21, window_bounds = array<i64: 16, 128>}, {pipeline_mode = #tpu.pipeline_mode<synchronous>, transform_indices = @transform_22, window_bounds = array<i64: 128, 16>}, {pipeline_mode = #tpu.pipeline_mode<synchronous>, transform_indices = @transform_23, window_bounds = array<i64: 2, 128>}, {pipeline_mode = #tpu.pipeline_mode<synchronous>, transform_indices = @transform_24, window_bounds = array<i64: 2, 16>}, {pipeline_mode = #tpu.pipeline_mode<synchronous>, transform_indices = @transform_25, window_bounds = array<i64: 4, 128>}]} {
    %c0 = arith.constant 0 : index
    %c0_0 = arith.constant 0 : index
    %0 = vector.load %arg1[%c0, %c0_0] : memref<8x16xf32, #tpu.memory_space<vmem>>, vector<8x16xf32>
    %c0_1 = arith.constant 0 : index
    %c0_2 = arith.constant 0 : index
    %1 = vector.load %arg3[%c0_1, %c0_2] : memref<8x128xf32, #tpu.memory_space<vmem>>, vector<8x128xf32>
    %c0_3 = arith.constant 0 : index
    %c0_4 = arith.constant 0 : index
    %2 = vector.load %arg19[%c0_3, %c0_4] : memref<8x4xf32, #tpu.memory_space<vmem>>, vector<8x4xf32>
    %c0_5 = arith.constant 0 : index
    %c0_6 = arith.constant 0 : index
    %3 = vector.load %arg20[%c0_5, %c0_6] : memref<4x8xf32, #tpu.memory_space<vmem>>, vector<4x8xf32>
    %c0_7 = arith.constant 0 : index
    %c0_8 = arith.constant 0 : index
    %4 = vector.load %arg21[%c0_7, %c0_8] : memref<16x128xf32, #tpu.memory_space<vmem>>, vector<16x128xf32>
    %c0_9 = arith.constant 0 : index
    %c0_10 = arith.constant 0 : index
    %5 = vector.load %arg22[%c0_9, %c0_10] : memref<16x128xf32, #tpu.memory_space<vmem>>, vector<16x128xf32>
    %c0_11 = arith.constant 0 : index
    %c0_12 = arith.constant 0 : index
    %6 = vector.load %arg23[%c0_11, %c0_12] : memref<128x16xf32, #tpu.memory_space<vmem>>, vector<128x16xf32>
    %7 = arith.addf %4, %5 : vector<16x128xf32>
    %c0_13 = arith.constant 0 : index
    %c0_14 = arith.constant 0 : index
    %8 = vector.load %arg4[%c0_13, %c0_14] : memref<16x2xf32, #tpu.memory_space<vmem>>, vector<16x2xf32>
    %9 = arith.negf %8 : vector<16x2xf32>
    %10 = math.exp %9 : vector<16x2xf32>
    %cst = arith.constant 1.000000e+00 : f32
    %11 = vector.broadcast %cst : f32 to vector<16x2xf32>
    %12 = arith.addf %11, %10 : vector<16x2xf32>
    %13 = arith.divf %11, %12 : vector<16x2xf32>
    %14 = arith.mulf %8, %13 : vector<16x2xf32>
    %c0_15 = arith.constant 0 : index
    %c0_16 = arith.constant 0 : index
    %15 = vector.load %arg5[%c0_15, %c0_16] : memref<20x16xf32, #tpu.memory_space<vmem>>, vector<20x16xf32>
    %cst_17 = arith.constant dense<0.000000e+00> : vector<20x2xf32>
    %16 = tpu.matmul %15, %14, %cst_17 {dimension_numbers = #tpu.dot_dimension_numbers<[1], [0], [0], [1], [0, 0, 1, 1], [], []>} : vector<20x16xf32>, vector<16x2xf32>, vector<20x2xf32> -> vector<20x2xf32>
    %c0_18 = arith.constant 0 : index
    %c0_19 = arith.constant 0 : index
    %17 = vector.load %arg6[%c0_18, %c0_19] : memref<20x1xf32, #tpu.memory_space<vmem>>, vector<20x1xf32>
    %18 = vector.broadcast %17 : vector<20x1xf32> to vector<20x2xf32>
    %19 = arith.addf %16, %18 : vector<20x2xf32>
    %20 = vector.extract_strided_slice %19 {offsets = [0, 0], sizes = [8, 2], strides = [1, 1]} : vector<20x2xf32> to vector<8x2xf32>
    %21 = vector.extract_strided_slice %19 {offsets = [8, 0], sizes = [8, 2], strides = [1, 1]} : vector<20x2xf32> to vector<8x2xf32>
    %c0_20 = arith.constant 0 : index
    %c0_21 = arith.constant 0 : index
    %22 = vector.load %arg24[%c0_20, %c0_21] : memref<2x128xf32, #tpu.memory_space<vmem>>, vector<2x128xf32>
    %cst_22 = arith.constant dense<0.000000e+00> : vector<8x128xf32>
    %23 = tpu.matmul %20, %22, %cst_22 {dimension_numbers = #tpu.dot_dimension_numbers<[1], [0], [0], [1], [0, 0, 1, 1], [], []>} : vector<8x2xf32>, vector<2x128xf32>, vector<8x128xf32> -> vector<8x128xf32>
    %24 = arith.addf %1, %23 : vector<8x128xf32>
    %c0_23 = arith.constant 0 : index
    %c0_24 = arith.constant 0 : index
    %25 = vector.load %arg25[%c0_23, %c0_24] : memref<2x16xf32, #tpu.memory_space<vmem>>, vector<2x16xf32>
    %cst_25 = arith.constant dense<0.000000e+00> : vector<8x16xf32>
    %26 = tpu.matmul %21, %25, %cst_25 {dimension_numbers = #tpu.dot_dimension_numbers<[1], [0], [0], [1], [0, 0, 1, 1], [], []>} : vector<8x2xf32>, vector<2x16xf32>, vector<8x16xf32> -> vector<8x16xf32>
    %27 = arith.addf %0, %26 : vector<8x16xf32>
    %c0_26 = arith.constant 0 : index
    %c0_27 = arith.constant 0 : index
    %c0_28 = arith.constant 0 : index
    %28 = vector.load %arg7[%c0_26, %c0_27, %c0_28] : memref<3x32x8xf32, #tpu.memory_space<vmem>>, vector<1x32x8xf32>
    %29 = vector.shape_cast %28 : vector<1x32x8xf32> to vector<32x8xf32>
    %cst_29 = arith.constant dense<0.000000e+00> : vector<32x16xf32>
    %30 = tpu.matmul %29, %27, %cst_29 {dimension_numbers = #tpu.dot_dimension_numbers<[1], [0], [0], [1], [0, 0, 1, 1], [], []>} : vector<32x8xf32>, vector<8x16xf32>, vector<32x16xf32> -> vector<32x16xf32>
    %c0_30 = arith.constant 0 : index
    %c0_31 = arith.constant 0 : index
    %c0_32 = arith.constant 0 : index
    %31 = vector.load %arg8[%c0_30, %c0_31, %c0_32] : memref<3x32x1xf32, #tpu.memory_space<vmem>>, vector<1x32x1xf32>
    %32 = vector.shape_cast %31 : vector<1x32x1xf32> to vector<32x1xf32>
    %33 = vector.broadcast %32 : vector<32x1xf32> to vector<32x16xf32>
    %34 = arith.addf %30, %33 : vector<32x16xf32>
    %35 = vector.extract_strided_slice %34 {offsets = [0, 0], sizes = [8, 16], strides = [1, 1]} : vector<32x16xf32> to vector<8x16xf32>
    %36 = vector.extract_strided_slice %34 {offsets = [8, 0], sizes = [8, 16], strides = [1, 1]} : vector<32x16xf32> to vector<8x16xf32>
    %37 = vector.extract_strided_slice %34 {offsets = [16, 0], sizes = [8, 16], strides = [1, 1]} : vector<32x16xf32> to vector<8x16xf32>
    %38 = vector.extract_strided_slice %34 {offsets = [24, 0], sizes = [8, 16], strides = [1, 1]} : vector<32x16xf32> to vector<8x16xf32>
    %c0_33 = arith.constant 0 : index
    %c0_34 = arith.constant 0 : index
    %c0_35 = arith.constant 0 : index
    %39 = vector.load %arg9[%c0_33, %c0_34, %c0_35] : memref<3x8x8xf32, #tpu.memory_space<vmem>>, vector<1x8x8xf32>
    %40 = vector.shape_cast %39 : vector<1x8x8xf32> to vector<8x8xf32>
    %cst_36 = arith.constant dense<0.000000e+00> : vector<8x128xf32>
    %41 = tpu.matmul %40, %24, %cst_36 {dimension_numbers = #tpu.dot_dimension_numbers<[1], [0], [0], [1], [0, 0, 1, 1], [], []>} : vector<8x8xf32>, vector<8x128xf32>, vector<8x128xf32> -> vector<8x128xf32>
    %c0_37 = arith.constant 0 : index
    %c0_38 = arith.constant 0 : index
    %c0_39 = arith.constant 0 : index
    %42 = vector.load %arg10[%c0_37, %c0_38, %c0_39] : memref<3x8x1xf32, #tpu.memory_space<vmem>>, vector<1x8x1xf32>
    %43 = vector.shape_cast %42 : vector<1x8x1xf32> to vector<8x1xf32>
    %44 = vector.broadcast %43 : vector<8x1xf32> to vector<8x128xf32>
    %45 = arith.addf %41, %44 : vector<8x128xf32>
    %cst_40 = arith.constant dense<0.000000e+00> : vector<8x128xf32>
    %46 = tpu.matmul %35, %4, %cst_40 {dimension_numbers = #tpu.dot_dimension_numbers<[1], [0], [0], [1], [0, 0, 1, 1], [], []>} : vector<8x16xf32>, vector<16x128xf32>, vector<8x128xf32> -> vector<8x128xf32>
    %cst_41 = arith.constant dense<0.000000e+00> : vector<8x128xf32>
    %47 = tpu.matmul %36, %5, %cst_41 {dimension_numbers = #tpu.dot_dimension_numbers<[1], [0], [0], [1], [0, 0, 1, 1], [], []>} : vector<8x16xf32>, vector<16x128xf32>, vector<8x128xf32> -> vector<8x128xf32>
    %cst_42 = arith.constant dense<0.000000e+00> : vector<8x128xf32>
    %48 = tpu.matmul %37, %5, %cst_42 {dimension_numbers = #tpu.dot_dimension_numbers<[1], [0], [0], [1], [0, 0, 1, 1], [], []>} : vector<8x16xf32>, vector<16x128xf32>, vector<8x128xf32> -> vector<8x128xf32>
    %49 = arith.addf %47, %45 : vector<8x128xf32>
    %50 = arith.mulf %46, %49 : vector<8x128xf32>
    %cst_43 = arith.constant dense<0.000000e+00> : vector<4x128xf32>
    %51 = tpu.matmul %3, %50, %cst_43 {dimension_numbers = #tpu.dot_dimension_numbers<[1], [0], [0], [1], [0, 0, 1, 1], [], []>} : vector<4x8xf32>, vector<8x128xf32>, vector<4x128xf32> -> vector<4x128xf32>
    %cst_44 = arith.constant 0.707106769 : f32
    %52 = vector.broadcast %cst_44 : f32 to vector<4x128xf32>
    %53 = arith.mulf %51, %52 : vector<4x128xf32>
    %cst_45 = arith.constant dense<0xFF800000> : vector<4xf32>
    %54 = vector.multi_reduction <maximumf>, %53, %cst_45 [1] : vector<4x128xf32> to vector<4xf32>
    %55 = vector.shape_cast %54 : vector<4xf32> to vector<4x1xf32>
    %56 = vector.broadcast %55 : vector<4x1xf32> to vector<4x128xf32>
    %57 = arith.subf %53, %56 : vector<4x128xf32>
    %58 = math.exp %57 : vector<4x128xf32>
    %cst_46 = arith.constant dense<0.000000e+00> : vector<4x16xf32>
    %59 = tpu.matmul %58, %6, %cst_46 {dimension_numbers = #tpu.dot_dimension_numbers<[1], [0], [0], [1], [0, 0, 1, 1], [], []>} : vector<4x128xf32>, vector<128x16xf32>, vector<4x16xf32> -> vector<4x16xf32>
    %cst_47 = arith.constant 1.000000e+00 : f32
    %60 = vector.broadcast %cst_47 : f32 to vector<4x16xf32>
    %61 = arith.divf %60, %59 : vector<4x16xf32>
    %cst_48 = arith.constant dense<0.000000e+00> : vector<4x128xf32>
    %62 = tpu.matmul %61, %4, %cst_48 {dimension_numbers = #tpu.dot_dimension_numbers<[1], [0], [0], [1], [0, 0, 1, 1], [], []>} : vector<4x16xf32>, vector<16x128xf32>, vector<4x128xf32> -> vector<4x128xf32>
    %63 = arith.mulf %58, %62 : vector<4x128xf32>
    %cst_49 = arith.constant dense<0.000000e+00> : vector<8x128xf32>
    %64 = tpu.matmul %2, %63, %cst_49 {dimension_numbers = #tpu.dot_dimension_numbers<[1], [0], [0], [1], [0, 0, 1, 1], [], []>} : vector<8x4xf32>, vector<4x128xf32>, vector<8x128xf32> -> vector<8x128xf32>
    %65 = arith.addf %48, %45 : vector<8x128xf32>
    %66 = arith.mulf %64, %65 : vector<8x128xf32>
    %cst_50 = arith.constant dense<0.000000e+00> : vector<8x16xf32>
    %67 = tpu.matmul %66, %6, %cst_50 {dimension_numbers = #tpu.dot_dimension_numbers<[1], [0], [0], [1], [0, 0, 1, 1], [], []>} : vector<8x128xf32>, vector<128x16xf32>, vector<8x16xf32> -> vector<8x16xf32>
    %68 = arith.addf %67, %38 : vector<8x16xf32>
    %cst_51 = arith.constant dense<0.000000e+00> : vector<8x128xf32>
    %69 = tpu.matmul %68, %7, %cst_51 {dimension_numbers = #tpu.dot_dimension_numbers<[1], [0], [0], [1], [0, 0, 1, 1], [], []>} : vector<8x16xf32>, vector<16x128xf32>, vector<8x128xf32> -> vector<8x128xf32>
    %c0_52 = arith.constant 0 : index
    %c0_53 = arith.constant 0 : index
    %c0_54 = arith.constant 0 : index
    %70 = vector.load %arg14[%c0_52, %c0_53, %c0_54] : memref<3x8x8xf32, #tpu.memory_space<vmem>>, vector<1x8x8xf32>
    %71 = vector.shape_cast %70 : vector<1x8x8xf32> to vector<8x8xf32>
    %cst_55 = arith.constant dense<0.000000e+00> : vector<8x128xf32>
    %72 = tpu.matmul %71, %69, %cst_55 {dimension_numbers = #tpu.dot_dimension_numbers<[1], [0], [0], [1], [0, 0, 1, 1], [], []>} : vector<8x8xf32>, vector<8x128xf32>, vector<8x128xf32> -> vector<8x128xf32>
    %c0_56 = arith.constant 0 : index
    %c0_57 = arith.constant 0 : index
    %c0_58 = arith.constant 0 : index
    %73 = vector.load %arg15[%c0_56, %c0_57, %c0_58] : memref<3x8x1xf32, #tpu.memory_space<vmem>>, vector<1x8x1xf32>
    %74 = vector.shape_cast %73 : vector<1x8x1xf32> to vector<8x1xf32>
    %75 = vector.broadcast %74 : vector<8x1xf32> to vector<8x128xf32>
    %76 = arith.addf %72, %75 : vector<8x128xf32>
    %77 = arith.negf %76 : vector<8x128xf32>
    %78 = math.exp %77 : vector<8x128xf32>
    %cst_59 = arith.constant 1.000000e+00 : f32
    %79 = vector.broadcast %cst_59 : f32 to vector<8x128xf32>
    %80 = arith.addf %79, %78 : vector<8x128xf32>
    %81 = arith.divf %79, %80 : vector<8x128xf32>
    %82 = arith.mulf %76, %81 : vector<8x128xf32>
    %83 = arith.addf %24, %82 : vector<8x128xf32>
    %cst_60 = arith.constant 0.707106769 : f32
    %84 = vector.broadcast %cst_60 : f32 to vector<8x128xf32>
    %85 = arith.mulf %83, %84 : vector<8x128xf32>
    %c1 = arith.constant 1 : index
    %c0_61 = arith.constant 0 : index
    %c0_62 = arith.constant 0 : index
    %86 = vector.load %arg7[%c1, %c0_61, %c0_62] : memref<3x32x8xf32, #tpu.memory_space<vmem>>, vector<1x32x8xf32>
    %87 = vector.shape_cast %86 : vector<1x32x8xf32> to vector<32x8xf32>
    %cst_63 = arith.constant dense<0.000000e+00> : vector<32x16xf32>
    %88 = tpu.matmul %87, %68, %cst_63 {dimension_numbers = #tpu.dot_dimension_numbers<[1], [0], [0], [1], [0, 0, 1, 1], [], []>} : vector<32x8xf32>, vector<8x16xf32>, vector<32x16xf32> -> vector<32x16xf32>
    %c1_64 = arith.constant 1 : index
    %c0_65 = arith.constant 0 : index
    %c0_66 = arith.constant 0 : index
    %89 = vector.load %arg8[%c1_64, %c0_65, %c0_66] : memref<3x32x1xf32, #tpu.memory_space<vmem>>, vector<1x32x1xf32>
    %90 = vector.shape_cast %89 : vector<1x32x1xf32> to vector<32x1xf32>
    %91 = vector.broadcast %90 : vector<32x1xf32> to vector<32x16xf32>
    %92 = arith.addf %88, %91 : vector<32x16xf32>
    %93 = vector.extract_strided_slice %92 {offsets = [0, 0], sizes = [8, 16], strides = [1, 1]} : vector<32x16xf32> to vector<8x16xf32>
    %94 = vector.extract_strided_slice %92 {offsets = [8, 0], sizes = [8, 16], strides = [1, 1]} : vector<32x16xf32> to vector<8x16xf32>
    %95 = vector.extract_strided_slice %92 {offsets = [16, 0], sizes = [8, 16], strides = [1, 1]} : vector<32x16xf32> to vector<8x16xf32>
    %96 = vector.extract_strided_slice %92 {offsets = [24, 0], sizes = [8, 16], strides = [1, 1]} : vector<32x16xf32> to vector<8x16xf32>
    %c1_67 = arith.constant 1 : index
    %c0_68 = arith.constant 0 : index
    %c0_69 = arith.constant 0 : index
    %97 = vector.load %arg9[%c1_67, %c0_68, %c0_69] : memref<3x8x8xf32, #tpu.memory_space<vmem>>, vector<1x8x8xf32>
    %98 = vector.shape_cast %97 : vector<1x8x8xf32> to vector<8x8xf32>
    %cst_70 = arith.constant dense<0.000000e+00> : vector<8x128xf32>
    %99 = tpu.matmul %98, %85, %cst_70 {dimension_numbers = #tpu.dot_dimension_numbers<[1], [0], [0], [1], [0, 0, 1, 1], [], []>} : vector<8x8xf32>, vector<8x128xf32>, vector<8x128xf32> -> vector<8x128xf32>
    %c1_71 = arith.constant 1 : index
    %c0_72 = arith.constant 0 : index
    %c0_73 = arith.constant 0 : index
    %100 = vector.load %arg10[%c1_71, %c0_72, %c0_73] : memref<3x8x1xf32, #tpu.memory_space<vmem>>, vector<1x8x1xf32>
    %101 = vector.shape_cast %100 : vector<1x8x1xf32> to vector<8x1xf32>
    %102 = vector.broadcast %101 : vector<8x1xf32> to vector<8x128xf32>
    %103 = arith.addf %99, %102 : vector<8x128xf32>
    %cst_74 = arith.constant dense<0.000000e+00> : vector<8x128xf32>
    %104 = tpu.matmul %93, %4, %cst_74 {dimension_numbers = #tpu.dot_dimension_numbers<[1], [0], [0], [1], [0, 0, 1, 1], [], []>} : vector<8x16xf32>, vector<16x128xf32>, vector<8x128xf32> -> vector<8x128xf32>
    %cst_75 = arith.constant dense<0.000000e+00> : vector<8x128xf32>
    %105 = tpu.matmul %94, %5, %cst_75 {dimension_numbers = #tpu.dot_dimension_numbers<[1], [0], [0], [1], [0, 0, 1, 1], [], []>} : vector<8x16xf32>, vector<16x128xf32>, vector<8x128xf32> -> vector<8x128xf32>
    %cst_76 = arith.constant dense<0.000000e+00> : vector<8x128xf32>
    %106 = tpu.matmul %95, %5, %cst_76 {dimension_numbers = #tpu.dot_dimension_numbers<[1], [0], [0], [1], [0, 0, 1, 1], [], []>} : vector<8x16xf32>, vector<16x128xf32>, vector<8x128xf32> -> vector<8x128xf32>
    %107 = arith.addf %105, %103 : vector<8x128xf32>
    %108 = arith.mulf %104, %107 : vector<8x128xf32>
    %cst_77 = arith.constant dense<0.000000e+00> : vector<4x128xf32>
    %109 = tpu.matmul %3, %108, %cst_77 {dimension_numbers = #tpu.dot_dimension_numbers<[1], [0], [0], [1], [0, 0, 1, 1], [], []>} : vector<4x8xf32>, vector<8x128xf32>, vector<4x128xf32> -> vector<4x128xf32>
    %cst_78 = arith.constant 0.707106769 : f32
    %110 = vector.broadcast %cst_78 : f32 to vector<4x128xf32>
    %111 = arith.mulf %109, %110 : vector<4x128xf32>
    %cst_79 = arith.constant dense<0xFF800000> : vector<4xf32>
    %112 = vector.multi_reduction <maximumf>, %111, %cst_79 [1] : vector<4x128xf32> to vector<4xf32>
    %113 = vector.shape_cast %112 : vector<4xf32> to vector<4x1xf32>
    %114 = vector.broadcast %113 : vector<4x1xf32> to vector<4x128xf32>
    %115 = arith.subf %111, %114 : vector<4x128xf32>
    %116 = math.exp %115 : vector<4x128xf32>
    %cst_80 = arith.constant dense<0.000000e+00> : vector<4x16xf32>
    %117 = tpu.matmul %116, %6, %cst_80 {dimension_numbers = #tpu.dot_dimension_numbers<[1], [0], [0], [1], [0, 0, 1, 1], [], []>} : vector<4x128xf32>, vector<128x16xf32>, vector<4x16xf32> -> vector<4x16xf32>
    %cst_81 = arith.constant 1.000000e+00 : f32
    %118 = vector.broadcast %cst_81 : f32 to vector<4x16xf32>
    %119 = arith.divf %118, %117 : vector<4x16xf32>
    %cst_82 = arith.constant dense<0.000000e+00> : vector<4x128xf32>
    %120 = tpu.matmul %119, %4, %cst_82 {dimension_numbers = #tpu.dot_dimension_numbers<[1], [0], [0], [1], [0, 0, 1, 1], [], []>} : vector<4x16xf32>, vector<16x128xf32>, vector<4x128xf32> -> vector<4x128xf32>
    %121 = arith.mulf %116, %120 : vector<4x128xf32>
    %cst_83 = arith.constant dense<0.000000e+00> : vector<8x128xf32>
    %122 = tpu.matmul %2, %121, %cst_83 {dimension_numbers = #tpu.dot_dimension_numbers<[1], [0], [0], [1], [0, 0, 1, 1], [], []>} : vector<8x4xf32>, vector<4x128xf32>, vector<8x128xf32> -> vector<8x128xf32>
    %123 = arith.addf %106, %103 : vector<8x128xf32>
    %124 = arith.mulf %122, %123 : vector<8x128xf32>
    %cst_84 = arith.constant dense<0.000000e+00> : vector<8x16xf32>
    %125 = tpu.matmul %124, %6, %cst_84 {dimension_numbers = #tpu.dot_dimension_numbers<[1], [0], [0], [1], [0, 0, 1, 1], [], []>} : vector<8x128xf32>, vector<128x16xf32>, vector<8x16xf32> -> vector<8x16xf32>
    %126 = arith.addf %125, %96 : vector<8x16xf32>
    %cst_85 = arith.constant dense<0.000000e+00> : vector<8x128xf32>
    %127 = tpu.matmul %126, %7, %cst_85 {dimension_numbers = #tpu.dot_dimension_numbers<[1], [0], [0], [1], [0, 0, 1, 1], [], []>} : vector<8x16xf32>, vector<16x128xf32>, vector<8x128xf32> -> vector<8x128xf32>
    %c1_86 = arith.constant 1 : index
    %c0_87 = arith.constant 0 : index
    %c0_88 = arith.constant 0 : index
    %128 = vector.load %arg14[%c1_86, %c0_87, %c0_88] : memref<3x8x8xf32, #tpu.memory_space<vmem>>, vector<1x8x8xf32>
    %129 = vector.shape_cast %128 : vector<1x8x8xf32> to vector<8x8xf32>
    %cst_89 = arith.constant dense<0.000000e+00> : vector<8x128xf32>
    %130 = tpu.matmul %129, %127, %cst_89 {dimension_numbers = #tpu.dot_dimension_numbers<[1], [0], [0], [1], [0, 0, 1, 1], [], []>} : vector<8x8xf32>, vector<8x128xf32>, vector<8x128xf32> -> vector<8x128xf32>
    %c1_90 = arith.constant 1 : index
    %c0_91 = arith.constant 0 : index
    %c0_92 = arith.constant 0 : index
    %131 = vector.load %arg15[%c1_90, %c0_91, %c0_92] : memref<3x8x1xf32, #tpu.memory_space<vmem>>, vector<1x8x1xf32>
    %132 = vector.shape_cast %131 : vector<1x8x1xf32> to vector<8x1xf32>
    %133 = vector.broadcast %132 : vector<8x1xf32> to vector<8x128xf32>
    %134 = arith.addf %130, %133 : vector<8x128xf32>
    %135 = arith.negf %134 : vector<8x128xf32>
    %136 = math.exp %135 : vector<8x128xf32>
    %cst_93 = arith.constant 1.000000e+00 : f32
    %137 = vector.broadcast %cst_93 : f32 to vector<8x128xf32>
    %138 = arith.addf %137, %136 : vector<8x128xf32>
    %139 = arith.divf %137, %138 : vector<8x128xf32>
    %140 = arith.mulf %134, %139 : vector<8x128xf32>
    %141 = arith.addf %85, %140 : vector<8x128xf32>
    %cst_94 = arith.constant 0.707106769 : f32
    %142 = vector.broadcast %cst_94 : f32 to vector<8x128xf32>
    %143 = arith.mulf %141, %142 : vector<8x128xf32>
    %c2 = arith.constant 2 : index
    %c0_95 = arith.constant 0 : index
    %c0_96 = arith.constant 0 : index
    %144 = vector.load %arg7[%c2, %c0_95, %c0_96] : memref<3x32x8xf32, #tpu.memory_space<vmem>>, vector<1x32x8xf32>
    %145 = vector.shape_cast %144 : vector<1x32x8xf32> to vector<32x8xf32>
    %cst_97 = arith.constant dense<0.000000e+00> : vector<32x16xf32>
    %146 = tpu.matmul %145, %126, %cst_97 {dimension_numbers = #tpu.dot_dimension_numbers<[1], [0], [0], [1], [0, 0, 1, 1], [], []>} : vector<32x8xf32>, vector<8x16xf32>, vector<32x16xf32> -> vector<32x16xf32>
    %c2_98 = arith.constant 2 : index
    %c0_99 = arith.constant 0 : index
    %c0_100 = arith.constant 0 : index
    %147 = vector.load %arg8[%c2_98, %c0_99, %c0_100] : memref<3x32x1xf32, #tpu.memory_space<vmem>>, vector<1x32x1xf32>
    %148 = vector.shape_cast %147 : vector<1x32x1xf32> to vector<32x1xf32>
    %149 = vector.broadcast %148 : vector<32x1xf32> to vector<32x16xf32>
    %150 = arith.addf %146, %149 : vector<32x16xf32>
    %151 = vector.extract_strided_slice %150 {offsets = [0, 0], sizes = [8, 16], strides = [1, 1]} : vector<32x16xf32> to vector<8x16xf32>
    %152 = vector.extract_strided_slice %150 {offsets = [8, 0], sizes = [8, 16], strides = [1, 1]} : vector<32x16xf32> to vector<8x16xf32>
    %153 = vector.extract_strided_slice %150 {offsets = [16, 0], sizes = [8, 16], strides = [1, 1]} : vector<32x16xf32> to vector<8x16xf32>
    %154 = vector.extract_strided_slice %150 {offsets = [24, 0], sizes = [8, 16], strides = [1, 1]} : vector<32x16xf32> to vector<8x16xf32>
    %c2_101 = arith.constant 2 : index
    %c0_102 = arith.constant 0 : index
    %c0_103 = arith.constant 0 : index
    %155 = vector.load %arg9[%c2_101, %c0_102, %c0_103] : memref<3x8x8xf32, #tpu.memory_space<vmem>>, vector<1x8x8xf32>
    %156 = vector.shape_cast %155 : vector<1x8x8xf32> to vector<8x8xf32>
    %cst_104 = arith.constant dense<0.000000e+00> : vector<8x128xf32>
    %157 = tpu.matmul %156, %143, %cst_104 {dimension_numbers = #tpu.dot_dimension_numbers<[1], [0], [0], [1], [0, 0, 1, 1], [], []>} : vector<8x8xf32>, vector<8x128xf32>, vector<8x128xf32> -> vector<8x128xf32>
    %c2_105 = arith.constant 2 : index
    %c0_106 = arith.constant 0 : index
    %c0_107 = arith.constant 0 : index
    %158 = vector.load %arg10[%c2_105, %c0_106, %c0_107] : memref<3x8x1xf32, #tpu.memory_space<vmem>>, vector<1x8x1xf32>
    %159 = vector.shape_cast %158 : vector<1x8x1xf32> to vector<8x1xf32>
    %160 = vector.broadcast %159 : vector<8x1xf32> to vector<8x128xf32>
    %161 = arith.addf %157, %160 : vector<8x128xf32>
    %cst_108 = arith.constant dense<0.000000e+00> : vector<8x128xf32>
    %162 = tpu.matmul %151, %4, %cst_108 {dimension_numbers = #tpu.dot_dimension_numbers<[1], [0], [0], [1], [0, 0, 1, 1], [], []>} : vector<8x16xf32>, vector<16x128xf32>, vector<8x128xf32> -> vector<8x128xf32>
    %cst_109 = arith.constant dense<0.000000e+00> : vector<8x128xf32>
    %163 = tpu.matmul %152, %5, %cst_109 {dimension_numbers = #tpu.dot_dimension_numbers<[1], [0], [0], [1], [0, 0, 1, 1], [], []>} : vector<8x16xf32>, vector<16x128xf32>, vector<8x128xf32> -> vector<8x128xf32>
    %cst_110 = arith.constant dense<0.000000e+00> : vector<8x128xf32>
    %164 = tpu.matmul %153, %5, %cst_110 {dimension_numbers = #tpu.dot_dimension_numbers<[1], [0], [0], [1], [0, 0, 1, 1], [], []>} : vector<8x16xf32>, vector<16x128xf32>, vector<8x128xf32> -> vector<8x128xf32>
    %165 = arith.addf %163, %161 : vector<8x128xf32>
    %166 = arith.mulf %162, %165 : vector<8x128xf32>
    %cst_111 = arith.constant dense<0.000000e+00> : vector<4x128xf32>
    %167 = tpu.matmul %3, %166, %cst_111 {dimension_numbers = #tpu.dot_dimension_numbers<[1], [0], [0], [1], [0, 0, 1, 1], [], []>} : vector<4x8xf32>, vector<8x128xf32>, vector<4x128xf32> -> vector<4x128xf32>
    %cst_112 = arith.constant 0.707106769 : f32
    %168 = vector.broadcast %cst_112 : f32 to vector<4x128xf32>
    %169 = arith.mulf %167, %168 : vector<4x128xf32>
    %cst_113 = arith.constant dense<0xFF800000> : vector<4xf32>
    %170 = vector.multi_reduction <maximumf>, %169, %cst_113 [1] : vector<4x128xf32> to vector<4xf32>
    %171 = vector.shape_cast %170 : vector<4xf32> to vector<4x1xf32>
    %172 = vector.broadcast %171 : vector<4x1xf32> to vector<4x128xf32>
    %173 = arith.subf %169, %172 : vector<4x128xf32>
    %174 = math.exp %173 : vector<4x128xf32>
    %cst_114 = arith.constant dense<0.000000e+00> : vector<4x16xf32>
    %175 = tpu.matmul %174, %6, %cst_114 {dimension_numbers = #tpu.dot_dimension_numbers<[1], [0], [0], [1], [0, 0, 1, 1], [], []>} : vector<4x128xf32>, vector<128x16xf32>, vector<4x16xf32> -> vector<4x16xf32>
    %cst_115 = arith.constant 1.000000e+00 : f32
    %176 = vector.broadcast %cst_115 : f32 to vector<4x16xf32>
    %177 = arith.divf %176, %175 : vector<4x16xf32>
    %cst_116 = arith.constant dense<0.000000e+00> : vector<4x128xf32>
    %178 = tpu.matmul %177, %4, %cst_116 {dimension_numbers = #tpu.dot_dimension_numbers<[1], [0], [0], [1], [0, 0, 1, 1], [], []>} : vector<4x16xf32>, vector<16x128xf32>, vector<4x128xf32> -> vector<4x128xf32>
    %179 = arith.mulf %174, %178 : vector<4x128xf32>
    %cst_117 = arith.constant dense<0.000000e+00> : vector<8x128xf32>
    %180 = tpu.matmul %2, %179, %cst_117 {dimension_numbers = #tpu.dot_dimension_numbers<[1], [0], [0], [1], [0, 0, 1, 1], [], []>} : vector<8x4xf32>, vector<4x128xf32>, vector<8x128xf32> -> vector<8x128xf32>
    %181 = arith.addf %164, %161 : vector<8x128xf32>
    %182 = arith.mulf %180, %181 : vector<8x128xf32>
    %cst_118 = arith.constant dense<0.000000e+00> : vector<8x16xf32>
    %183 = tpu.matmul %182, %6, %cst_118 {dimension_numbers = #tpu.dot_dimension_numbers<[1], [0], [0], [1], [0, 0, 1, 1], [], []>} : vector<8x128xf32>, vector<128x16xf32>, vector<8x16xf32> -> vector<8x16xf32>
    %184 = arith.addf %183, %154 : vector<8x16xf32>
    %cst_119 = arith.constant dense<0.000000e+00> : vector<8x128xf32>
    %185 = tpu.matmul %184, %7, %cst_119 {dimension_numbers = #tpu.dot_dimension_numbers<[1], [0], [0], [1], [0, 0, 1, 1], [], []>} : vector<8x16xf32>, vector<16x128xf32>, vector<8x128xf32> -> vector<8x128xf32>
    %c2_120 = arith.constant 2 : index
    %c0_121 = arith.constant 0 : index
    %c0_122 = arith.constant 0 : index
    %186 = vector.load %arg14[%c2_120, %c0_121, %c0_122] : memref<3x8x8xf32, #tpu.memory_space<vmem>>, vector<1x8x8xf32>
    %187 = vector.shape_cast %186 : vector<1x8x8xf32> to vector<8x8xf32>
    %cst_123 = arith.constant dense<0.000000e+00> : vector<8x128xf32>
    %188 = tpu.matmul %187, %185, %cst_123 {dimension_numbers = #tpu.dot_dimension_numbers<[1], [0], [0], [1], [0, 0, 1, 1], [], []>} : vector<8x8xf32>, vector<8x128xf32>, vector<8x128xf32> -> vector<8x128xf32>
    %c2_124 = arith.constant 2 : index
    %c0_125 = arith.constant 0 : index
    %c0_126 = arith.constant 0 : index
    %189 = vector.load %arg15[%c2_124, %c0_125, %c0_126] : memref<3x8x1xf32, #tpu.memory_space<vmem>>, vector<1x8x1xf32>
    %190 = vector.shape_cast %189 : vector<1x8x1xf32> to vector<8x1xf32>
    %191 = vector.broadcast %190 : vector<8x1xf32> to vector<8x128xf32>
    %192 = arith.addf %188, %191 : vector<8x128xf32>
    %193 = arith.negf %192 : vector<8x128xf32>
    %194 = math.exp %193 : vector<8x128xf32>
    %cst_127 = arith.constant 1.000000e+00 : f32
    %195 = vector.broadcast %cst_127 : f32 to vector<8x128xf32>
    %196 = arith.addf %195, %194 : vector<8x128xf32>
    %197 = arith.divf %195, %196 : vector<8x128xf32>
    %198 = arith.mulf %192, %197 : vector<8x128xf32>
    %199 = arith.addf %143, %198 : vector<8x128xf32>
    %cst_128 = arith.constant 0.707106769 : f32
    %200 = vector.broadcast %cst_128 : f32 to vector<8x128xf32>
    %201 = arith.mulf %199, %200 : vector<8x128xf32>
    %c0_129 = arith.constant 0 : index
    %c0_130 = arith.constant 0 : index
    %202 = vector.load %arg16[%c0_129, %c0_130] : memref<4x8xf32, #tpu.memory_space<vmem>>, vector<4x8xf32>
    %cst_131 = arith.constant dense<0.000000e+00> : vector<4x128xf32>
    %203 = tpu.matmul %202, %24, %cst_131 {dimension_numbers = #tpu.dot_dimension_numbers<[1], [0], [0], [1], [0, 0, 1, 1], [], []>} : vector<4x8xf32>, vector<8x128xf32>, vector<4x128xf32> -> vector<4x128xf32>
    %c0_132 = arith.constant 0 : index
    %c0_133 = arith.constant 0 : index
    %204 = vector.load %arg17[%c0_132, %c0_133] : memref<4x8xf32, #tpu.memory_space<vmem>>, vector<4x8xf32>
    %cst_134 = arith.constant dense<0.000000e+00> : vector<4x128xf32>
    %205 = tpu.matmul %204, %201, %cst_134 {dimension_numbers = #tpu.dot_dimension_numbers<[1], [0], [0], [1], [0, 0, 1, 1], [], []>} : vector<4x8xf32>, vector<8x128xf32>, vector<4x128xf32> -> vector<4x128xf32>
    %206 = arith.addf %203, %205 : vector<4x128xf32>
    %c0_135 = arith.constant 0 : index
    %c0_136 = arith.constant 0 : index
    %207 = vector.load %arg18[%c0_135, %c0_136] : memref<4x1xf32, #tpu.memory_space<vmem>>, vector<4x1xf32>
    %208 = vector.broadcast %207 : vector<4x1xf32> to vector<4x128xf32>
    %209 = arith.addf %206, %208 : vector<4x128xf32>
    %c0_137 = arith.constant 0 : index
    %c0_138 = arith.constant 0 : index
    %210 = vector.load %arg26[%c0_137, %c0_138] : memref<4x128xf32, #tpu.memory_space<vmem>>, vector<4x128xf32>
    tpu.vector_store %arg26[%c0_137, %c0_138], %209 {strides = array<i32>} : memref<4x128xf32, #tpu.memory_space<vmem>>, vector<4x128xf32>,
    return
  }
  func.func @transform_0(%arg0: i32) -> (i32, i32) {
    %c0_i32 = arith.constant 0 : i32
    %c0_i32_0 = arith.constant 0 : i32
    %c0_i32_1 = arith.constant 0 : i32
    return %c0_i32, %c0_i32_0 : i32, i32
  }
  func.func @transform_1(%arg0: i32) -> (i32, i32) {
    %c0_i32 = arith.constant 0 : i32
    %c0_i32_0 = arith.constant 0 : i32
    %c0_i32_1 = arith.constant 0 : i32
    return %c0_i32, %c0_i32_0 : i32, i32
  }
  func.func @transform_2(%arg0: i32) -> (i32, i32) {
    %c0_i32 = arith.constant 0 : i32
    %c0_i32_0 = arith.constant 0 : i32
    %c0_i32_1 = arith.constant 0 : i32
    return %c0_i32, %c0_i32_0 : i32, i32
  }
  func.func @transform_3(%arg0: i32) -> (i32, i32) {
    %c0_i32 = arith.constant 0 : i32
    %c0_i32_0 = arith.constant 0 : i32
    %c0_i32_1 = arith.constant 0 : i32
    return %c0_i32, %c0_i32_0 : i32, i32
  }
  func.func @transform_4(%arg0: i32) -> (i32, i32) {
    %c0_i32 = arith.constant 0 : i32
    %c0_i32_0 = arith.constant 0 : i32
    %c0_i32_1 = arith.constant 0 : i32
    return %c0_i32, %c0_i32_0 : i32, i32
  }
  func.func @transform_5(%arg0: i32) -> (i32, i32) {
    %c0_i32 = arith.constant 0 : i32
    %c0_i32_0 = arith.constant 0 : i32
    %c0_i32_1 = arith.constant 0 : i32
    return %c0_i32, %c0_i32_0 : i32, i32
  }
  func.func @transform_6(%arg0: i32) -> (i32, i32, i32) {
    %c0_i32 = arith.constant 0 : i32
    %c0_i32_0 = arith.constant 0 : i32
    %c0_i32_1 = arith.constant 0 : i32
    %c0_i32_2 = arith.constant 0 : i32
    return %c0_i32, %c0_i32_0, %c0_i32_1 : i32, i32, i32
  }
  func.func @transform_7(%arg0: i32) -> (i32, i32, i32) {
    %c0_i32 = arith.constant 0 : i32
    %c0_i32_0 = arith.constant 0 : i32
    %c0_i32_1 = arith.constant 0 : i32
    %c0_i32_2 = arith.constant 0 : i32
    return %c0_i32, %c0_i32_0, %c0_i32_1 : i32, i32, i32
  }
  func.func @transform_8(%arg0: i32) -> (i32, i32, i32) {
    %c0_i32 = arith.constant 0 : i32
    %c0_i32_0 = arith.constant 0 : i32
    %c0_i32_1 = arith.constant 0 : i32
    %c0_i32_2 = arith.constant 0 : i32
    return %c0_i32, %c0_i32_0, %c0_i32_1 : i32, i32, i32
  }
  func.func @transform_9(%arg0: i32) -> (i32, i32, i32) {
    %c0_i32 = arith.constant 0 : i32
    %c0_i32_0 = arith.constant 0 : i32
    %c0_i32_1 = arith.constant 0 : i32
    %c0_i32_2 = arith.constant 0 : i32
    return %c0_i32, %c0_i32_0, %c0_i32_1 : i32, i32, i32
  }
  func.func @transform_10(%arg0: i32) -> (i32, i32, i32) {
    %c0_i32 = arith.constant 0 : i32
    %c0_i32_0 = arith.constant 0 : i32
    %c0_i32_1 = arith.constant 0 : i32
    %c0_i32_2 = arith.constant 0 : i32
    return %c0_i32, %c0_i32_0, %c0_i32_1 : i32, i32, i32
  }
  func.func @transform_11(%arg0: i32) -> (i32, i32, i32) {
    %c0_i32 = arith.constant 0 : i32
    %c0_i32_0 = arith.constant 0 : i32
    %c0_i32_1 = arith.constant 0 : i32
    %c0_i32_2 = arith.constant 0 : i32
    return %c0_i32, %c0_i32_0, %c0_i32_1 : i32, i32, i32
  }
  func.func @transform_12(%arg0: i32) -> (i32, i32, i32) {
    %c0_i32 = arith.constant 0 : i32
    %c0_i32_0 = arith.constant 0 : i32
    %c0_i32_1 = arith.constant 0 : i32
    %c0_i32_2 = arith.constant 0 : i32
    return %c0_i32, %c0_i32_0, %c0_i32_1 : i32, i32, i32
  }
  func.func @transform_13(%arg0: i32) -> (i32, i32, i32) {
    %c0_i32 = arith.constant 0 : i32
    %c0_i32_0 = arith.constant 0 : i32
    %c0_i32_1 = arith.constant 0 : i32
    %c0_i32_2 = arith.constant 0 : i32
    return %c0_i32, %c0_i32_0, %c0_i32_1 : i32, i32, i32
  }
  func.func @transform_14(%arg0: i32) -> (i32, i32, i32) {
    %c0_i32 = arith.constant 0 : i32
    %c0_i32_0 = arith.constant 0 : i32
    %c0_i32_1 = arith.constant 0 : i32
    %c0_i32_2 = arith.constant 0 : i32
    return %c0_i32, %c0_i32_0, %c0_i32_1 : i32, i32, i32
  }
  func.func @transform_15(%arg0: i32) -> (i32, i32) {
    %c0_i32 = arith.constant 0 : i32
    %c0_i32_0 = arith.constant 0 : i32
    %c0_i32_1 = arith.constant 0 : i32
    return %c0_i32, %c0_i32_0 : i32, i32
  }
  func.func @transform_16(%arg0: i32) -> (i32, i32) {
    %c0_i32 = arith.constant 0 : i32
    %c0_i32_0 = arith.constant 0 : i32
    %c0_i32_1 = arith.constant 0 : i32
    return %c0_i32, %c0_i32_0 : i32, i32
  }
  func.func @transform_17(%arg0: i32) -> (i32, i32) {
    %c0_i32 = arith.constant 0 : i32
    %c0_i32_0 = arith.constant 0 : i32
    %c0_i32_1 = arith.constant 0 : i32
    return %c0_i32, %c0_i32_0 : i32, i32
  }
  func.func @transform_18(%arg0: i32) -> (i32, i32) {
    %c0_i32 = arith.constant 0 : i32
    %c0_i32_0 = arith.constant 0 : i32
    %c0_i32_1 = arith.constant 0 : i32
    return %c0_i32, %c0_i32_0 : i32, i32
  }
  func.func @transform_19(%arg0: i32) -> (i32, i32) {
    %c0_i32 = arith.constant 0 : i32
    %c0_i32_0 = arith.constant 0 : i32
    %c0_i32_1 = arith.constant 0 : i32
    return %c0_i32, %c0_i32_0 : i32, i32
  }
  func.func @transform_20(%arg0: i32) -> (i32, i32) {
    %c0_i32 = arith.constant 0 : i32
    %c0_i32_0 = arith.constant 0 : i32
    %c0_i32_1 = arith.constant 0 : i32
    return %c0_i32, %c0_i32_0 : i32, i32
  }
  func.func @transform_21(%arg0: i32) -> (i32, i32) {
    %c0_i32 = arith.constant 0 : i32
    %c0_i32_0 = arith.constant 0 : i32
    %c0_i32_1 = arith.constant 0 : i32
    return %c0_i32, %c0_i32_0 : i32, i32
  }
  func.func @transform_22(%arg0: i32) -> (i32, i32) {
    %c0_i32 = arith.constant 0 : i32
    %c0_i32_0 = arith.constant 0 : i32
    %c0_i32_1 = arith.constant 0 : i32
    return %c0_i32, %c0_i32_0 : i32, i32
  }
  func.func @transform_23(%arg0: i32) -> (i32, i32) {
    %c0_i32 = arith.constant 0 : i32
    %c0_i32_0 = arith.constant 0 : i32
    %c0_i32_1 = arith.constant 0 : i32
    return %c0_i32, %c0_i32_0 : i32, i32
  }
  func.func @transform_24(%arg0: i32) -> (i32, i32) {
    %c0_i32 = arith.constant 0 : i32
    %c0_i32_0 = arith.constant 0 : i32
    %c0_i32_1 = arith.constant 0 : i32
    return %c0_i32, %c0_i32_0 : i32, i32
  }
  func.func @transform_25(%arg0: i32) -> (i32, i32) {
    %c0_i32 = arith.constant 0 : i32
    %c0_i32_0 = arith.constant 0 : i32
    %c0_i32_1 = arith.constant 0 : i32
    return %c0_i32, %c0_i32_0 : i32, i32
  }
}

</mosaic_0001>

<bundles_post_ra>
// kernel: pos_gnn_forward.1
= control target key start
LH: loop header
LB: loop body
LE: loop exit
PB: predicated region body
PF: predicated region fallthrough
CT: control target
= control target key end

     0   :  { %v4373_v0 = vmov 0.0|0.0   ;;  %vm4374_vm0 = vmmov 0   ;;  %v4375_v3 = vmov 0.0   ;;  %v4376_v6 = vmov 0   ;;  %s5088_s1 = inlined_call_operand.vmem [shape: f32[4,16], index: 1, kind: input, shape index: {}]   ;;  %s5089_s10 = inlined_call_operand.vmem [shape: f32[3,4,4], index: 10, kind: input, shape index: {}]   ;;  %s5090_s11 = inlined_call_operand.vmem [shape: f32[3,4,4], index: 11, kind: input, shape index: {}]   ;;  %s5091_s12 = inlined_call_operand.vmem [shape: f32[3,4,1], index: 12, kind: input, shape index: {}]   ;;  %s5092_s3 = inlined_call_operand.vmem [shape: f32[16,2], index: 3, kind: input, shape index: {}]   ;;  %s5093_s5 = inlined_call_operand.vmem [shape: f32[20,1], index: 5, kind: input, shape index: {}]   ;;  %s5094_s9 = inlined_call_operand.vmem [shape: f32[3,8,1], index: 9, kind: input, shape index: {}]   ;;  %s5095_s7 = inlined_call_operand.vmem [shape: f32[3,32,1], index: 7, kind: input, shape index: {}]   ;;  %s5096_s14 = inlined_call_operand.vmem [shape: f32[3,8,1], index: 14, kind: input, shape index: {}]   ;;  %s5097_s4 = inlined_call_operand.vmem [shape: f32[20,16], index: 4, kind: input, shape index: {}]   ;;  %s5098_s23 = inlined_call_operand.vmem [shape: f32[2,128], index: 23, kind: input, shape index: {}]   ;;  %s5099_s24 = inlined_call_operand.vmem [shape: f32[2,16], index: 24, kind: input, shape index: {}]   ;;  %s5100_s6 = inlined_call_operand.vmem [shape: f32[3,32,8], index: 6, kind: input, shape index: {}]   ;;  %s5101_s2 = inlined_call_operand.vmem [shape: f32[8,128], index: 2, kind: input, shape index: {}]   ;;  %s5102_s8 = inlined_call_operand.vmem [shape: f32[3,8,8], index: 8, kind: input, shape index: {}]   ;;  %s5103_s0 = inlined_call_operand.vmem [shape: f32[8,16], index: 0, kind: input, shape index: {}]   ;;  %s5104_s21 = inlined_call_operand.vmem [shape: f32[16,128], index: 21, kind: input, shape index: {}]   ;;  %s5105_s20 = inlined_call_operand.vmem [shape: f32[16,128], index: 20, kind: input, shape index: {}]   ;;  %s5106_s19 = inlined_call_operand.vmem [shape: f32[4,8], index: 19, kind: input, shape index: {}]   ;;  %s5107_s22 = inlined_call_operand.vmem [shape: f32[128,16], index: 22, kind: input, shape index: {}]   ;;  %s5108_s18 = inlined_call_operand.vmem [shape: f32[8,4], index: 18, kind: input, shape index: {}]   ;;  %s5109_s13 = inlined_call_operand.vmem [shape: f32[3,8,8], index: 13, kind: input, shape index: {}]   ;;  %s5110_s17 = inlined_call_operand.vmem [shape: f32[4,1], index: 17, kind: input, shape index: {}]   ;;  %s5111_s16 = inlined_call_operand.vmem [shape: f32[4,8], index: 16, kind: input, shape index: {}]   ;;  %s5112_s15 = inlined_call_operand.vmem [shape: f32[4,8], index: 15, kind: input, shape index: {}]   ;;  %s5113_s25 = inlined_call_operand.vmem [shape: f32[4,128], index: 25, kind: output, shape index: {}]  }
   0x1   :  { %5120 = sst [smem:[#allocation2_spill]] %s5092_s3  ;;  %4143 = vmatprep.subr.bf16.mxu0 %v4373_v0  ;;  %3715 = vmatprep.mubr.msk.f32.mxu0 %vm4374_vm0, %v4375_v3  ;;  %vm142_vm1 = vcmask 130048   ;;  %v231_v27 = vld [vmem:[%s5098_s23] sm:$0x3]  ;;  %vm236_vm2 = vcmask 1041408   ;;  %vm232_vm3 = vcmask 15360  }
   0x2   :  { %5121 = sst [smem:[#allocation3_spill]] %s5093_s5  ;;  %s5126_s11 = sld [smem:[#allocation2_spill]]  ;;  %4339 = vset.pattern.permute.xlu0 %v4376_v6  ;;  %3724 = vmatprep.subr.mxu1 %v4375_v3  ;;  %v311_v33 = vld [vmem:[%s5099_s24] sm:$0x3]  ;;  %vm417_vm4 = vcmask 64512   ;;  %v390_v52 = vld [vmem:[%s5100_s6 + $0x8] sm:$0xff] }
   0x3   :  { %5122 = sst [smem:[#allocation4_spill]] %s5094_s9  ;;  %s5127_s3 = sld [smem:[#allocation3_spill]]  ;;  %3726 = vmatprep.mubr.msk.f32.mxu1 %vm4374_vm0, %v4375_v3  ;;  %4340 = vset.pattern.permute.xlu1 %v4376_v6  ;;  %v389_v40 = vld [vmem:[%s5100_s6] sm:$0xff]  ;;  %v391_v53 = vld [vmem:[%s5100_s6 + $0x10] sm:$0xff]  ;;  %v392_v54 = vld [vmem:[%s5100_s6 + $0x18] sm:$0xff]  ;;  %vm816_vm5 = vcmask 1043456  }
   0x4   :  { %5123 = sst [smem:[#allocation5_spill]] %s5095_s7  ;;  %s5128_s28 = sld [smem:[#allocation4_spill]]  ;;  %3725 = vmatpush3.msk.msra.mxu1 %vm236_vm2, %v231_v27  ;;  %v81_v43 = vld [vmem:[%s5101_s2] sm:$0xff]  ;;  %v4625_v56 = vld [vmem:[%s5104_s21 + $0x8] sm:$0xff]  ;;  %v94_v27 = vld [vmem:[%s5107_s22 + $0x30] sm:$0xff]  ;;  %vm969_vm6 = vcmask 31744  }
   0x5   :  { %5124 = sst [smem:[#allocation6_spill]] %s5096_s14  ;;  %s5129_s9 = sld [smem:[#allocation5_spill]]  ;;  %3729 = vmatprep.subr.mxu1 %v4375_v3  ;;  %v515_v47 = vld [vmem:[%s5102_s8] sm:$0xff]  ;;  %v4635_v58 = vld [vmem:[%s5105_s20 + $0x8] sm:$0xff] }
   0x6   :  { %5125 = sst [smem:[#allocation7_spill]] %s5097_s4  ;;  %s5130_s12 = sld [smem:[#allocation6_spill]]  ;;  %v80_v48 = vld [vmem:[%s5103_s0] sm:$0xff] }
   0x7   :  { %s5131_s29 = sld [smem:[#allocation7_spill]]  ;;  %v4620_v55 = vld [vmem:[%s5104_s21] sm:$0xff] }
   0x8   :  { %v106_v1 = vld [vmem:[%s5126_s11] sm:$0xff]  ;;  %v107_v2 = vld [vmem:[%s5126_s11 + $0x8] sm:$0xff]  ;;  %v4639_v59 = vpack.c.bf16 %v4625_v56, %v4620_v55 }
   0x9   :  { %v3432_v4 = vmul.f32 -1.442695, %v106_v1  ;;  %v3433_v5 = vmul.f32 -1.442695, %v107_v2  ;;  %v125_v7 = vld [vmem:[%s5127_s3] sm:$0xff]  ;;  %v126_v8 = vld [vmem:[%s5127_s3 + $0x8] sm:$0xff] }
   0xa   :  { %130 = vperm.xlu0 %4339, %v125_v7   ;;  %v516_v9 = vld [vmem:[%s5128_s28] sm:$0xff]  ;;  %v3469_v24 = vld [vmem:[%s5128_s28 + $0x8] sm:$0xff] }
   0xb   :  { %4341 = vpow2.f32 %v3432_v4  ;;  %v395_v10 = vld [vmem:[%s5129_s9 + $0x10] sm:$0xff]  ;;  %v396_v15 = vld [vmem:[%s5129_s9 + $0x18] sm:$0xff]  ;;  %v3461_v17 = vld [vmem:[%s5129_s9 + $0x28] sm:$0xff] }
   0xc   :  { %4343 = vpow2.f32 %v3433_v5  ;;  %v1264_v16 = vld [vmem:[%s5130_s12] sm:$0xff]  ;;  %v394_v41 = vld [vmem:[%s5129_s9 + $0x8] sm:$0xff] }
   0xd   :  { %v3460_v21 = vld [vmem:[%s5129_s9 + $0x20] sm:$0xff]  ;;  %v123_v26 = vld [vmem:[%s5131_s29 + $0x8] sm:$0xff]  ;;  %v124_v28 = vld [vmem:[%s5131_s29 + $0x10] sm:$0xf]  ;;  %404 = vperm.xlu1 %4340, %v394_v41  }
   0xe   :  { %135 = vperm.xlu0 %4339, %v126_v8   ;;  %v122_v25 = vld [vmem:[%s5131_s29] sm:$0xff]  ;;  %v3463_v41 = vld [vmem:[%s5129_s9 + $0x38] sm:$0xff] }
   0xf   :  { %v393_v42 = vld [vmem:[%s5129_s9] sm:$0xff] }
  0x10   :  { %v4630_v57 = vld [vmem:[%s5105_s20] sm:$0xff] }
  0x11   :  { %399 = vperm.xlu1 %4340, %v393_v42   ;;  %v4643_v60 = vpack.c.bf16 %v4635_v58, %v4630_v57  ;;  %v100_v42 = vld [vmem:[%s5107_s22 + $0x60] sm:$0xff] }
  0x12   :  { %519 = vperm.xlu0 %4339, %v516_v9  }
  0x15   :  { %v4342_v11 = vpop.eup %4341 }
  0x16   :  { %v4344_v12 = vpop.eup %4343  ;;  %v114_v13 = vadd.f32 1.0, %v4342_v11  ;;  %409 = vperm.xlu0 %4339, %v395_v10  }
  0x17   :  { %v115_v14 = vadd.f32 1.0, %v4344_v12 }
  0x18   :  { %4345 = vrcp.f32 %v114_v13 }
  0x19   :  { %4347 = vrcp.f32 %v115_v14 }
  0x1a   :  { %414 = vperm.xlu0 %4339, %v396_v15  }
  0x1e   :  { %1267 = vperm.xlu0 %4339, %v1264_v16  }
  0x22   :  { %v4346_v18 = vpop.eup %4345  ;;  %1369 = vperm.xlu0 %4339, %v3461_v17   ;;  %v4665_v17 = vld [vmem:[%s5106_s19] sm:$0xf] }
  0x23   :  { %v4348_v19 = vpop.eup %4347  ;;  %v120_v20 = vmul.f32 %v4346_v18, %v106_v1  ;;  %v88_v18 = vld [vmem:[%s5107_s22] sm:$0xff] }
  0x24   :  { %v121_v22 = vmul.f32 %v4348_v19, %v107_v2  ;;  %v89_v19 = vld [vmem:[%s5107_s22 + $0x8] sm:$0xff] }
  0x26   :  { %v4144_v23 = vpack.c.bf16 %v121_v22, %v120_v20  ;;  %1364 = vperm.xlu0 %4339, %v3460_v21   ;;  %v90_v20 = vld [vmem:[%s5107_s22 + $0x10] sm:$0xff]  ;;  %v4683_v21 = vpack.c.bf16 %v89_v19, %v88_v18  ;;  %v91_v22 = vld [vmem:[%s5107_s22 + $0x18] sm:$0xff]  ;;  %v104_v18 = vadd.f32 %v4620_v55, %v4630_v57  ;;  %v105_v19 = vadd.f32 %v4625_v56, %v4635_v58  ;;  %v1263_v55 = vld [vmem:[%s5109_s13] sm:$0xff] }
  0x27   :  { %v3456_v57 = vld [vmem:[%s5100_s6 + $0x20] sm:$0xff] }
  0x28   :  { %4145 = vmatpush3.bf16.msra.mxu0 %v4144_v23  ;;  %v4689_v23 = vpack.c.bf16 %v91_v22, %v90_v20  ;;  %v4815_v20 = vpack.c.bf16 %v105_v19, %v104_v18  ;;  %v3488_v18 = vld [vmem:[%s5129_s9 + $0x48] sm:$0xff]  ;;  %v3489_v19 = vld [vmem:[%s5129_s9 + $0x50] sm:$0xff] }
  0x29   :  { %3742 = vmatprep.subr.mxu0 %v4375_v3 }
  0x2a   :  { %1485 = vperm.xlu0 %4339, %v3469_v24   ;;  %v92_v24 = vld [vmem:[%s5107_s22 + $0x20] sm:$0xff] }
  0x2b   :  { %3716 = vmatmul.mubr.msk.f32.vlgmr.msra.gmra.mrb[0].mxu0 %vm142_vm1, %v122_v25  ;;  %v93_v25 = vld [vmem:[%s5107_s22 + $0x28] sm:$0xff] }
  0x2c   :  { %3718 = vmatprep.mubr.msk.f32.mxu0 %vm4374_vm0, %v4375_v3 }
  0x2f   :  { %3719 = vmatmul.mubr.msk.f32.gmra.mrb[2].mxu0 %vm142_vm1, %v123_v26  ;;  %v4699_v26 = vpack.c.bf16 %v93_v25, %v92_v24 }
  0x30   :  { %3721 = vmatprep.mubr.msk.f32.mxu0 %vm4374_vm0, %v4375_v3 }
  0x33   :  { %3722 = vmatmul.mubr.msk.f32.gmra.mrb[4].mxu0 %vm142_vm1, %v124_v28  ;;  %v95_v28 = vld [vmem:[%s5107_s22 + $0x38] sm:$0xff] }
  0x34   :  { %3744 = vmatprep.mubr.msk.f32.mxu0 %vm4374_vm0, %v4375_v3 }
  0x89   :  { %v131_v29 = vpop.permute.xlu0 %130 }
  0x8c   :  { %v405_v61 = vpop.permute.xlu1 %404 }
  0x8d   :  { %v136_v34 = vpop.permute.xlu0 %135 }
  0x90   :  { %v400_v2 = vpop.permute.xlu1 %399 }
  0x91   :  { %v520_v9 = vpop.permute.xlu0 %519 }
  0xfe   :  { %v218_v30 = vpop.f32.mrb[0].mxu0 }
  0xff   :  { %v219_v31 = vadd.f32 %v218_v30, %v131_v29  ;;  %v3717_v32 = vpop.f32.mrb[1].mxu0  ;;  %v4709_v29 = vpack.c.bf16 %v95_v28, %v94_v27  ;;  %v3458_v28 = vld [vmem:[%s5100_s6 + $0x30] sm:$0xff] }
 0x101   :  { %3727 = vmatmul.mubr.msk.f32.vlgmr.msra.gmra.mrb[0].mxu1 %vm232_vm3, %v219_v31 }
 0x102   :  { %v223_v35 = vpop.f32.mrb[2].mxu0  ;;  %3730 = vmatpush3.msk.msra.mxu1 %vm236_vm2, %v311_v33  ;;  %3731 = vmatprep.mubr.msk.f32.mxu1 %vm4374_vm0, %v4375_v3 }
 0x103   :  { %v224_v36 = vadd.f32 %v223_v35, %v136_v34  ;;  %v3720_v37 = vpop.f32.mrb[3].mxu0  ;;  %v96_v34 = vld [vmem:[%s5107_s22 + $0x40] sm:$0xff]  ;;  %v97_v35 = vld [vmem:[%s5107_s22 + $0x48] sm:$0xff] }
 0x104   :  { %v3462_v37 = vld [vmem:[%s5129_s9 + $0x30] sm:$0xff] }
 0x105   :  { %3732 = vmatmul.mubr.msk.f32.vlgmr.msra.gmra.mrb[2].mxu1 %vm232_vm3, %v224_v36  ;;  %v4721_v36 = vpack.c.bf16 %v97_v35, %v96_v34 }
 0x106   :  { %v228_v38 = vpop.f32.mrb[4].mxu0  ;;  %3736 = vmatprep.mubr.msk.f32.mxu1 %vm417_vm4, %v389_v40 }
 0x107   :  { %v3723_v39 = vpop.f32.mrb[5].mxu0  ;;  %v98_v38 = vld [vmem:[%s5107_s22 + $0x50] sm:$0xff] }
 0x108   :  { %v99_v39 = vld [vmem:[%s5107_s22 + $0x58] sm:$0xff] }
 0x109   :  { %v4734_v40 = vpack.c.bf16 %v99_v39, %v98_v38 }
 0x1d4   :  { %v306_v44 = vpop.f32.mrb[0].mxu1 }
 0x1d5   :  { %v4589_v45 = vadd.f32 %v306_v44, %v81_v43  ;;  %v3728_v46 = vpop.f32.mrb[1].mxu1  ;;  %v101_v43 = vld [vmem:[%s5107_s22 + $0x68] sm:$0xff] }
 0x1d6   :  { %v4747_v44 = vpack.c.bf16 %v101_v43, %v100_v42  ;;  %v3480_v46 = vld [vmem:[%s5130_s12 + $0x8] sm:$0xff] }
 0x1d7   :  { %3743 = vmatpush3.msra.mxu0 %v4589_v45 }
 0x1d8   :  { %v384_v49 = vpop.f32.mrb[2].mxu1  ;;  %3745 = vmatmul.mubr.msk.f32.vlgmr.msra.gmra.mrb[6].mxu0 %vm417_vm4, %v515_v47  ;;  %4149 = vmatprep.subr.bf16.mxu0 %v4373_v0  ;;  %v102_v47 = vld [vmem:[%s5107_s22 + $0x70] sm:$0xff] }
 0x1d9   :  { %v388_v50 = vadd.f32 %v384_v49, %v80_v48  ;;  %v3733_v51 = vpop.f32.mrb[3].mxu1  ;;  %3758 = vmatprep.mubr.msk.f32.mxu0 %vm4374_vm0, %v4375_v3  ;;  %4151 = vmatpush3.bf16.msra.mxu0 %v4639_v59  ;;  %v103_v48 = vld [vmem:[%s5107_s22 + $0x78] sm:$0xff] }
 0x1da   :  { %4152 = vmatprep.subr.bf16.mxu0 %v4373_v0  ;;  %v4760_v49 = vpack.c.bf16 %v103_v48, %v102_v47  ;;  %v3496_v51 = vld [vmem:[%s5128_s28 + $0x10] sm:$0xff] }
 0x1db   :  { %3734 = vmatprep.subr.mxu1 %v388_v50 }
 0x1dc   :  { %3735 = vmatpush3.msra.mxu1 %v388_v50  ;;  %v3487_v50 = vld [vmem:[%s5129_s9 + $0x40] sm:$0xff] }
 0x1dd   :  { %3737 = vmatmul.mubr.msk.f32.vlgmr.msra.gmra.mrb[4].mxu1 %vm417_vm4, %v390_v52  ;;  %4146 = vmatprep.subr.bf16.mxu1 %v4373_v0 }
 0x1de   :  { %3739 = vmatprep.mubr.msk.f32.mxu1 %vm417_vm4, %v391_v53  ;;  %4148 = vmatpush3.bf16.msra.mxu1 %v4643_v60 }
 0x1df   :  { %3761 = vmatprep.subr.mxu1 %v4375_v3 }
 0x1e1   :  { %3740 = vmatmul.mubr.msk.f32.gmra.mrb[6].mxu1 %vm417_vm4, %v392_v54 }
 0x1e2   :  { %3751 = vmatprep.mubr.msk.f32.mxu1 %vm4374_vm0, %v4375_v3 }
 0x2ab   :  { %v591_v62 = vpop.f32.mrb[6].mxu0 }
 0x2ac   :  { %v3746_v63 = vpop.f32.mrb[7].mxu0  ;;  %v4659_v10 = vadd.f32 %v591_v62, %v520_v9  ;;  %v410_v9 = vpop.permute.xlu0 %409 }
 0x2b0   :  { %v3738_v1 = vpop.f32.mrb[4].mxu1  ;;  %v415_v22 = vpop.permute.xlu0 %414 }
 0x2b1   :  { %v502_v4 = vadd.f32 %v3738_v1, %v405_v61  ;;  %v496_v5 = vpop.f32.mrb[5].mxu1 }
 0x2b2   :  { %v497_v6 = vadd.f32 %v496_v5, %v400_v2 }
 0x2b3   :  { %3759 = vmatmul.mubr.msk.f32.vlgmr.msra.gmra.mrb[8].mxu0 %vm142_vm1, %v502_v4 }
 0x2b4   :  { %v4650_v7 = vpop.f32.mrb[6].mxu1  ;;  %3752 = vmatmul.mubr.msk.f32.vlgmr.msra.gmra.mrb[8].mxu1 %vm142_vm1, %v497_v6  ;;  %3798 = vmatprep.mubr.msk.f32.mxu0 %vm4374_vm0, %v4375_v3  ;;  %v4778_v6 = vld [vmem:[%s5108_s18] sm:$0xff] }
 0x2b5   :  { %v4655_v8 = vpop.f32.mrb[7].mxu1  ;;  %3763 = vmatprep.mubr.msk.f32.mxu1 %vm4374_vm0, %v4375_v3  ;;  %4154 = vmatpush3.bf16.msra.mxu0 %v4683_v21 }
 0x2b6   :  { %4155 = vmatprep.subr.bf16.mxu0 %v4373_v0 }
 0x2b9   :  { %4157 = vmatpush3.bf16.msra.mxu0 %v4689_v23 }
 0x2ba   :  { %4158 = vmatprep.subr.bf16.mxu0 %v4373_v0 }
 0x2bd   :  { %4160 = vmatpush3.bf16.msra.mxu0 %v4699_v26 }
 0x2be   :  { %4161 = vmatprep.subr.bf16.mxu0 %v4373_v0 }
 0x2c1   :  { %4163 = vmatpush3.bf16.msra.mxu0 %v4709_v29 }
 0x2c2   :  { %4164 = vmatprep.subr.bf16.mxu0 %v4373_v0 }
 0x2c5   :  { %4166 = vmatpush3.bf16.msra.mxu0 %v4721_v36 }
 0x2c6   :  { %4167 = vmatprep.subr.bf16.mxu0 %v4373_v0 }
 0x2c9   :  { %4169 = vmatpush3.bf16.msra.mxu0 %v4734_v40 }
 0x2ca   :  { %4170 = vmatprep.subr.bf16.mxu0 %v4373_v0 }
 0x2cd   :  { %4172 = vmatpush3.bf16.msra.mxu0 %v4747_v44 }
 0x2ce   :  { %4173 = vmatprep.subr.bf16.mxu0 %v4373_v0 }
 0x2d1   :  { %4175 = vmatpush3.bf16.msra.mxu0 %v4760_v49 }
 0x2d2   :  { %4206 = vmatprep.subr.bf16.mxu0 %v4373_v0 }
 0x386   :  { %v737_v11 = vpop.f32.mrb[8].mxu0 }
 0x387   :  { %v738_v12 = vadd.f32 %v737_v11, %v4659_v10  ;;  %v664_v13 = vpop.f32.mrb[8].mxu1  ;;  %v3760_v14 = vpop.f32.mrb[9].mxu0  ;;  %v507_v11 = vadd.f32 %v4655_v8, %v410_v9 }
 0x388   :  { %v3753_v15 = vpop.f32.mrb[9].mxu1 }
 0x389   :  { %v741_v16 = vmul.f32 %v738_v12, %v664_v13 }
 0x38b   :  { %3762 = vmatpush3.msra.mxu1 %v741_v16 }
 0x38c   :  { %3764 = vmatmul.mubr.msk.f32.vlgmr.msra.gmra.mrb[10].mxu1 %vm417_vm4, %v4665_v17  ;;  %4176 = vmatprep.subr.bf16.mxu1 %v4373_v0 }
 0x38d   :  { %4178 = vmatpush3.bf16.msra.mxu1 %v4643_v60  ;;  %3805 = vmatprep.mubr.msk.f32.mxu1 %vm4374_vm0, %v4375_v3 }
 0x38e   :  { %3808 = vmatprep.subr.mxu1 %v4375_v3 }
 0x45f   :  { %v811_v30 = vpop.f32.mrb[10].mxu1 }
 0x460   :  { %v815_v31 = vmul.f32 0.70710677, %v811_v30  ;;  %v3765_v32 = vpop.f32.mrb[11].mxu1  ;;  %v3459_v30 = vld [vmem:[%s5100_s6 + $0x38] sm:$0xff] }
 0x462   :  { %v817_v33 = vsel %vm816_vm5, %v815_v31, -inf }
 0x463   :  { %818 = vmax.xlane.f32.xlu1 %v817_v33 }
 0x474   :  { %1374 = vperm.xlu1 %4340, %v3462_v37  }
 0x478   :  { %1379 = vperm.xlu1 %4340, %v3463_v41  }
 0x47c   :  { %2227 = vperm.xlu1 %4340, %v3480_v46  }
 0x480   :  { %2324 = vperm.xlu1 %4340, %v3487_v50  }
 0x484   :  { %2445 = vperm.xlu1 %4340, %v3496_v51  }
 0x4f0   :  { %v819_v52 = vpop.xlane.xlu1 %818 }
 0x4f1   :  { %v820_v53 = vsub.f32 %v815_v31, %v819_v52  ;;  %v1268_v31 = vpop.permute.xlu0 %1267 }
 0x4f3   :  { %v821_v54 = vmul.f32 1.442695, %v820_v53 }
 0x4f5   :  { %4349 = vpow2.f32 %v821_v54  ;;  %v1370_v32 = vpop.permute.xlu0 %1369  ;;  %v3468_v54 = vld [vmem:[%s5102_s8 + $0x8] sm:$0xff] }
 0x4f9   :  { %v1365_v39 = vpop.permute.xlu0 %1364 }
 0x4ff   :  { %v4350_v61 = vpop.eup %4349 }
 0x500   :  { %3799 = vmatmul.mubr.f32.vlgmr.msra.gmra.mrb[10].mxu0 %v4350_v61 }
 0x501   :  { %3859 = vmatprep.mubr.msk.f32.mxu0 %vm4374_vm0, %v4375_v3  ;;  %4208 = vmatpush3.bf16.msra.mxu0 %v4815_v20 }
 0x502   :  { %3862 = vmatprep.subr.mxu0 %v4375_v3 }
 0x5d3   :  { %v889_v62 = vpop.f32.mrb[10].mxu0 }
 0x5d4   :  { %4351 = vrcp.f32 %v889_v62  ;;  %v3800_v63 = vpop.f32.mrb[11].mxu0 }
 0x5de   :  { %v4352_v1 = vpop.eup %4351 }
 0x5df   :  { %3806 = vmatmul.mubr.msk.f32.vlgmr.msra.gmra.mrb[12].mxu1 %vm142_vm1, %v4352_v1 }
 0x5e0   :  { %3810 = vmatprep.mubr.msk.f32.mxu1 %vm4374_vm0, %v4375_v3 }
 0x6b2   :  { %v964_v2 = vpop.f32.mrb[12].mxu1 }
 0x6b3   :  { %v968_v4 = vmul.f32 %v4350_v61, %v964_v2  ;;  %v3807_v5 = vpop.f32.mrb[13].mxu1 }
 0x6b5   :  { %3809 = vmatpush3.msk.msra.mxu1 %vm816_vm5, %v968_v4  ;;  %v1486_v4 = vpop.permute.xlu0 %1485 }
 0x6b6   :  { %3811 = vmatmul.mubr.msk.f32.vlgmr.msra.gmra.mrb[14].mxu1 %vm969_vm6, %v4778_v6  ;;  %4179 = vmatprep.subr.bf16.mxu1 %v4373_v0 }
 0x6b7   :  { %4181 = vmatpush3.bf16.msra.mxu1 %v4639_v59  ;;  %3817 = vmatprep.mubr.msk.f32.mxu1 %vm4374_vm0, %v4375_v3 }
 0x6b8   :  { %4182 = vmatprep.subr.bf16.mxu1 %v4373_v0 }
 0x6ba   :  { %3818 = vmatmul.mubr.msk.f32.vlgmr.msra.gmra.mrb[16].mxu1 %vm142_vm1, %v507_v11 }
 0x6bb   :  { %4184 = vmatpush3.bf16.msra.mxu1 %v4683_v21  ;;  %3852 = vmatprep.mubr.msk.f32.mxu1 %vm4374_vm0, %v4375_v3 }
 0x6bc   :  { %4185 = vmatprep.subr.bf16.mxu1 %v4373_v0 }
 0x6bf   :  { %4187 = vmatpush3.bf16.msra.mxu1 %v4689_v23 }
 0x6c0   :  { %4188 = vmatprep.subr.bf16.mxu1 %v4373_v0 }
 0x6c3   :  { %4190 = vmatpush3.bf16.msra.mxu1 %v4699_v26 }
 0x6c4   :  { %4191 = vmatprep.subr.bf16.mxu1 %v4373_v0 }
 0x6c7   :  { %4193 = vmatpush3.bf16.msra.mxu1 %v4709_v29 }
 0x6c8   :  { %4194 = vmatprep.subr.bf16.mxu1 %v4373_v0 }
 0x6cb   :  { %4196 = vmatpush3.bf16.msra.mxu1 %v4721_v36 }
 0x6cc   :  { %4197 = vmatprep.subr.bf16.mxu1 %v4373_v0 }
 0x6cf   :  { %4199 = vmatpush3.bf16.msra.mxu1 %v4734_v40 }
 0x6d0   :  { %4200 = vmatprep.subr.bf16.mxu1 %v4373_v0 }
 0x6d3   :  { %4202 = vmatpush3.bf16.msra.mxu1 %v4747_v44 }
 0x6d4   :  { %4203 = vmatprep.subr.bf16.mxu1 %v4373_v0 }
 0x6d7   :  { %4205 = vmatpush3.bf16.msra.mxu1 %v4760_v49 }
 0x6d8   :  { %3875 = vmatprep.subr.mxu1 %v4375_v3 }
 0x789   :  { %v1042_v8 = vpop.f32.mrb[14].mxu1 }
 0x78a   :  { %v3812_v12 = vpop.f32.mrb[15].mxu1 }
 0x78d   :  { %v1115_v13 = vpop.f32.mrb[16].mxu1 }
 0x78e   :  { %v1116_v14 = vadd.f32 %v1115_v13, %v4659_v10  ;;  %v3819_v15 = vpop.f32.mrb[17].mxu1  ;;  %v512_v10 = vadd.f32 %v4650_v7, %v415_v22  ;;  %v3457_v7 = vld [vmem:[%s5100_s6 + $0x28] sm:$0xff]  ;;  %v3490_v22 = vld [vmem:[%s5129_s9 + $0x58] sm:$0xff] }
 0x790   :  { %v1119_v16 = vmul.f32 %v1116_v14, %v1042_v8 }
 0x792   :  { %3853 = vmatmul.mubr.f32.vlgmr.msra.gmra.mrb[18].mxu1 %v1119_v16 }
 0x793   :  { %3877 = vmatprep.mubr.msk.f32.mxu1 %vm4374_vm0, %v4375_v3 }
 0x865   :  { %v1186_v24 = vpop.f32.mrb[18].mxu1 }
 0x866   :  { %v1187_v25 = vadd.f32 %v1186_v24, %v512_v10  ;;  %v3854_v27 = vpop.f32.mrb[19].mxu1  ;;  %v3507_v10 = vld [vmem:[%s5130_s12 + $0x10] sm:$0xff]  ;;  %v3420_v24 = vld [vmem:[%s5110_s17] sm:$0xf] }
 0x868   :  { %3860 = vmatmul.mubr.msk.f32.vlgmr.msra.gmra.mrb[12].mxu0 %vm142_vm1, %v1187_v25 }
 0x869   :  { %3864 = vmatprep.mubr.msk.f32.mxu0 %vm4374_vm0, %v4375_v3 }
 0x93b   :  { %v1259_v56 = vpop.f32.mrb[12].mxu0 }
 0x93c   :  { %v3861_v58 = vpop.f32.mrb[13].mxu0  ;;  %3863 = vmatpush3.msra.mxu0 %v1259_v56 }
 0x93d   :  { %3865 = vmatmul.mubr.msk.f32.vlgmr.msra.gmra.mrb[14].mxu0 %vm417_vm4, %v1263_v55  ;;  %3867 = vmatprep.subr.mxu0 %v1187_v25 }
 0x93e   :  { %3868 = vmatpush3.msra.mxu0 %v1187_v25  ;;  %3869 = vmatprep.mubr.msk.f32.mxu0 %vm417_vm4, %v3456_v57 }
 0x93f   :  { %4209 = vmatprep.subr.bf16.mxu0 %v4373_v0 }
 0x941   :  { %3870 = vmatmul.mubr.msk.f32.vlgmr.msra.gmra.mrb[16].mxu0 %vm417_vm4, %v3457_v7 }
 0x942   :  { %3872 = vmatprep.mubr.msk.f32.mxu0 %vm417_vm4, %v3458_v28  ;;  %4211 = vmatpush3.bf16.msra.mxu0 %v4643_v60 }
 0x943   :  { %3894 = vmatprep.subr.mxu0 %v4375_v3 }
 0x945   :  { %3873 = vmatmul.mubr.msk.f32.gmra.mrb[18].mxu0 %vm417_vm4, %v3459_v30 }
 0x946   :  { %3884 = vmatprep.mubr.msk.f32.mxu0 %vm4374_vm0, %v4375_v3 }
 0xa10   :  { %v1339_v33 = vpop.f32.mrb[14].mxu0 }
 0xa11   :  { %v1340_v34 = vadd.f32 %v1339_v33, %v1268_v31  ;;  %v3866_v35 = vpop.f32.mrb[15].mxu0 }
 0xa13   :  { %v3455_v37 = vmul.f32 -1.442695, %v1340_v34 }
 0xa14   :  { %v3871_v38 = vpop.f32.mrb[16].mxu0 }
 0xa15   :  { %4353 = vpow2.f32 %v3455_v37  ;;  %v1460_v41 = vpop.f32.mrb[17].mxu0  ;;  %v1466_v61 = vadd.f32 %v3871_v38, %v1370_v32  ;;  %v1375_v32 = vpop.permute.xlu1 %1374 }
 0xa16   :  { %v1461_v42 = vadd.f32 %v1460_v41, %v1365_v39 }
 0xa18   :  { %v4848_v43 = vpop.f32.mrb[18].mxu0  ;;  %3885 = vmatmul.mubr.msk.f32.vlgmr.msra.gmra.mrb[20].mxu0 %vm142_vm1, %v1461_v42 }
 0xa19   :  { %v4851_v46 = vpop.f32.mrb[19].mxu0  ;;  %3896 = vmatprep.mubr.msk.f32.mxu0 %vm4374_vm0, %v4375_v3  ;;  %v1380_v42 = vpop.permute.xlu1 %1379 }
 0xa1a   :  { %v1471_v33 = vadd.f32 %v4851_v46, %v1375_v32  ;;  %v1476_v46 = vadd.f32 %v4848_v43, %v1380_v42  ;;  %v3484_v43 = vld [vmem:[%s5100_s6 + $0x48] sm:$0xff] }
 0xa1f   :  { %v4354_v47 = vpop.eup %4353 }
 0xa20   :  { %v1346_v48 = vadd.f32 1.0, %v4354_v47 }
 0xa22   :  { %4355 = vrcp.f32 %v1346_v48 }
 0xa2c   :  { %v4356_v50 = vpop.eup %4355 }
 0xa2d   :  { %v1349_v51 = vmul.f32 %v4356_v50, %v1340_v34 }
 0xa2f   :  { %v1350_v52 = vadd.f32 %v1349_v51, %v4589_v45  ;;  %v3479_v51 = vld [vmem:[%s5109_s13 + $0x8] sm:$0xff] }
 0xa31   :  { %v4856_v53 = vmul.f32 0.70710677, %v1350_v52 }
 0xa33   :  { %3876 = vmatpush3.msra.mxu1 %v4856_v53 }
 0xa34   :  { %3878 = vmatmul.mubr.msk.f32.vlgmr.msra.gmra.mrb[20].mxu1 %vm417_vm4, %v3468_v54  ;;  %4212 = vmatprep.subr.bf16.mxu1 %v4373_v0  ;;  %v3483_v54 = vld [vmem:[%s5100_s6 + $0x40] sm:$0xff] }
 0xa35   :  { %4214 = vmatpush3.bf16.msra.mxu1 %v4639_v59  ;;  %3891 = vmatprep.mubr.msk.f32.mxu1 %vm4374_vm0, %v4375_v3 }
 0xa36   :  { %4215 = vmatprep.subr.bf16.mxu1 %v4373_v0 }
 0xa38   :  { %3892 = vmatmul.mubr.msk.f32.vlgmr.msra.gmra.mrb[22].mxu1 %vm142_vm1, %v1466_v61 }
 0xa39   :  { %4217 = vmatpush3.bf16.msra.mxu1 %v4683_v21  ;;  %3931 = vmatprep.mubr.msk.f32.mxu1 %vm4374_vm0, %v4375_v3 }
 0xa3a   :  { %4218 = vmatprep.subr.bf16.mxu1 %v4373_v0 }
 0xa3d   :  { %4220 = vmatpush3.bf16.msra.mxu1 %v4689_v23 }
 0xa3e   :  { %4221 = vmatprep.subr.bf16.mxu1 %v4373_v0 }
 0xa41   :  { %4223 = vmatpush3.bf16.msra.mxu1 %v4699_v26 }
 0xa42   :  { %4224 = vmatprep.subr.bf16.mxu1 %v4373_v0 }
 0xa45   :  { %4226 = vmatpush3.bf16.msra.mxu1 %v4709_v29 }
 0xa46   :  { %4227 = vmatprep.subr.bf16.mxu1 %v4373_v0 }
 0xa49   :  { %4229 = vmatpush3.bf16.msra.mxu1 %v4721_v36 }
 0xa4a   :  { %4230 = vmatprep.subr.bf16.mxu1 %v4373_v0 }
 0xa4d   :  { %4232 = vmatpush3.bf16.msra.mxu1 %v4734_v40 }
 0xa4e   :  { %4233 = vmatprep.subr.bf16.mxu1 %v4373_v0 }
 0xa51   :  { %4235 = vmatpush3.bf16.msra.mxu1 %v4747_v44 }
 0xa52   :  { %4236 = vmatprep.subr.bf16.mxu1 %v4373_v0 }
 0xa55   :  { %4238 = vmatpush3.bf16.msra.mxu1 %v4760_v49 }
 0xa56   :  { %4269 = vmatprep.subr.bf16.mxu1 %v4373_v0 }
 0xaeb   :  { %v1630_v62 = vpop.f32.mrb[20].mxu0 }
 0xaec   :  { %v3886_v63 = vpop.f32.mrb[21].mxu0 }
 0xaed   :  { %v3486_v63 = vld [vmem:[%s5100_s6 + $0x58] sm:$0xff] }
 0xb07   :  { %v1557_v1 = vpop.f32.mrb[20].mxu1 }
 0xb08   :  { %v3879_v2 = vpop.f32.mrb[21].mxu1  ;;  %v4887_v5 = vadd.f32 %v1557_v1, %v1486_v4  ;;  %v2228_v1 = vpop.permute.xlu1 %2227 }
 0xb0b   :  { %v1703_v9 = vpop.f32.mrb[22].mxu1 }
 0xb0c   :  { %v1704_v11 = vadd.f32 %v1703_v9, %v4887_v5  ;;  %v3893_v8 = vpop.f32.mrb[23].mxu1 }
 0xb0d   :  { %v2325_v8 = vpop.permute.xlu1 %2324 }
 0xb0e   :  { %v1707_v12 = vmul.f32 %v1704_v11, %v1630_v62  ;;  %v3485_v62 = vld [vmem:[%s5100_s6 + $0x50] sm:$0xff] }
 0xb10   :  { %3895 = vmatpush3.msra.mxu0 %v1707_v12 }
 0xb11   :  { %3897 = vmatmul.mubr.msk.f32.vlgmr.msra.gmra.mrb[22].mxu0 %vm417_vm4, %v4665_v17  ;;  %4239 = vmatprep.subr.bf16.mxu0 %v4373_v0 }
 0xb12   :  { %4241 = vmatpush3.bf16.msra.mxu0 %v4643_v60  ;;  %3938 = vmatprep.mubr.msk.f32.mxu0 %vm4374_vm0, %v4375_v3 }
 0xb13   :  { %3941 = vmatprep.subr.mxu0 %v4375_v3 }
 0xbe4   :  { %v1774_v13 = vpop.f32.mrb[22].mxu0 }
 0xbe5   :  { %v1778_v14 = vmul.f32 0.70710677, %v1774_v13  ;;  %v3898_v15 = vpop.f32.mrb[23].mxu0 }
 0xbe7   :  { %v1779_v16 = vsel %vm816_vm5, %v1778_v14, -inf }
 0xbe8   :  { %1780 = vmax.xlane.f32.xlu0 %v1779_v16 }
 0xbfe   :  { %2329 = vperm.xlu0 %4339, %v3488_v18  }
 0xc02   :  { %2334 = vperm.xlu0 %4339, %v3489_v19  }
 0xc06   :  { %2339 = vperm.xlu0 %4339, %v3490_v22  }
 0xc0a   :  { %3187 = vperm.xlu0 %4339, %v3507_v10  }
 0xc0e   :  { %3423 = vperm.xlu0 %4339, %v3420_v24  }
 0xc75   :  { %v1781_v25 = vpop.xlane.xlu0 %1780 }
 0xc76   :  { %v1782_v27 = vsub.f32 %v1778_v14, %v1781_v25  ;;  %v3495_v25 = vld [vmem:[%s5102_s8 + $0x10] sm:$0xff] }
 0xc78   :  { %v1783_v55 = vmul.f32 1.442695, %v1782_v27 }
 0xc7a   :  { %4357 = vpow2.f32 %v1783_v55 }
 0xc7d   :  { %v2330_v27 = vpop.permute.xlu0 %2329 }
 0xc84   :  { %v4358_v56 = vpop.eup %4357 }
 0xc85   :  { %3932 = vmatmul.mubr.f32.vlgmr.msra.gmra.mrb[24].mxu1 %v4358_v56 }
 0xc86   :  { %4271 = vmatpush3.bf16.msra.mxu1 %v4815_v20  ;;  %3992 = vmatprep.mubr.msk.f32.mxu1 %vm4374_vm0, %v4375_v3 }
 0xc87   :  { %3995 = vmatprep.subr.mxu1 %v4375_v3 }
 0xd58   :  { %v1851_v57 = vpop.f32.mrb[24].mxu1 }
 0xd59   :  { %4359 = vrcp.f32 %v1851_v57  ;;  %v3933_v58 = vpop.f32.mrb[25].mxu1 }
 0xd63   :  { %v4360_v7 = vpop.eup %4359 }
 0xd64   :  { %3939 = vmatmul.mubr.msk.f32.vlgmr.msra.gmra.mrb[24].mxu0 %vm142_vm1, %v4360_v7  ;;  %v2446_v7 = vpop.permute.xlu1 %2445 }
 0xd65   :  { %3943 = vmatprep.mubr.msk.f32.mxu0 %vm4374_vm0, %v4375_v3 }
 0xe37   :  { %v1926_v28 = vpop.f32.mrb[24].mxu0 }
 0xe38   :  { %v1930_v30 = vmul.f32 %v4358_v56, %v1926_v28  ;;  %v3940_v31 = vpop.f32.mrb[25].mxu0 }
 0xe3a   :  { %3942 = vmatpush3.msk.msra.mxu0 %vm816_vm5, %v1930_v30 }
 0xe3b   :  { %3944 = vmatmul.mubr.msk.f32.vlgmr.msra.gmra.mrb[26].mxu0 %vm969_vm6, %v4778_v6  ;;  %4242 = vmatprep.subr.bf16.mxu0 %v4373_v0 }
 0xe3c   :  { %4244 = vmatpush3.bf16.msra.mxu0 %v4639_v59  ;;  %3950 = vmatprep.mubr.msk.f32.mxu0 %vm4374_vm0, %v4375_v3 }
 0xe3d   :  { %4245 = vmatprep.subr.bf16.mxu0 %v4373_v0 }
 0xe3f   :  { %3951 = vmatmul.mubr.msk.f32.vlgmr.msra.gmra.mrb[28].mxu0 %vm142_vm1, %v1471_v33 }
 0xe40   :  { %4247 = vmatpush3.bf16.msra.mxu0 %v4683_v21  ;;  %3985 = vmatprep.mubr.msk.f32.mxu0 %vm4374_vm0, %v4375_v3 }
 0xe41   :  { %4248 = vmatprep.subr.bf16.mxu0 %v4373_v0 }
 0xe44   :  { %4250 = vmatpush3.bf16.msra.mxu0 %v4689_v23 }
 0xe45   :  { %4251 = vmatprep.subr.bf16.mxu0 %v4373_v0 }
 0xe48   :  { %4253 = vmatpush3.bf16.msra.mxu0 %v4699_v26 }
 0xe49   :  { %4254 = vmatprep.subr.bf16.mxu0 %v4373_v0 }
 0xe4c   :  { %4256 = vmatpush3.bf16.msra.mxu0 %v4709_v29 }
 0xe4d   :  { %4257 = vmatprep.subr.bf16.mxu0 %v4373_v0 }
 0xe50   :  { %4259 = vmatpush3.bf16.msra.mxu0 %v4721_v36 }
 0xe51   :  { %4260 = vmatprep.subr.bf16.mxu0 %v4373_v0 }
 0xe54   :  { %4262 = vmatpush3.bf16.msra.mxu0 %v4734_v40 }
 0xe55   :  { %4263 = vmatprep.subr.bf16.mxu0 %v4373_v0 }
 0xe58   :  { %4265 = vmatpush3.bf16.msra.mxu0 %v4747_v44 }
 0xe59   :  { %4266 = vmatprep.subr.bf16.mxu0 %v4373_v0 }
 0xe5c   :  { %4268 = vmatpush3.bf16.msra.mxu0 %v4760_v49 }
 0xe5d   :  { %4008 = vmatprep.subr.mxu0 %v4375_v3 }
 0xf0e   :  { %v2000_v34 = vpop.f32.mrb[26].mxu0 }
 0xf0f   :  { %v3945_v35 = vpop.f32.mrb[27].mxu0 }
 0xf12   :  { %v2073_v37 = vpop.f32.mrb[28].mxu0 }
 0xf13   :  { %v2074_v38 = vadd.f32 %v2073_v37, %v4887_v5  ;;  %v3952_v39 = vpop.f32.mrb[29].mxu0 }
 0xf15   :  { %v2077_v41 = vmul.f32 %v2074_v38, %v2000_v34 }
 0xf17   :  { %3986 = vmatmul.mubr.f32.vlgmr.msra.gmra.mrb[30].mxu0 %v2077_v41 }
 0xf18   :  { %4010 = vmatprep.mubr.msk.f32.mxu0 %vm4374_vm0, %v4375_v3 }
 0xfea   :  { %v2144_v47 = vpop.f32.mrb[30].mxu0 }
 0xfeb   :  { %v2145_v48 = vadd.f32 %v2144_v47, %v1476_v46  ;;  %v3987_v50 = vpop.f32.mrb[31].mxu0 }
 0xfed   :  { %3993 = vmatmul.mubr.msk.f32.vlgmr.msra.gmra.mrb[26].mxu1 %vm142_vm1, %v2145_v48 }
 0xfee   :  { %3997 = vmatprep.mubr.msk.f32.mxu1 %vm4374_vm0, %v4375_v3 }
0x10c0   :  { %v2217_v52 = vpop.f32.mrb[26].mxu1 }
0x10c1   :  { %v3994_v61 = vpop.f32.mrb[27].mxu1  ;;  %3996 = vmatpush3.msra.mxu1 %v2217_v52 }
0x10c2   :  { %3998 = vmatmul.mubr.msk.f32.vlgmr.msra.gmra.mrb[28].mxu1 %vm417_vm4, %v3479_v51  ;;  %4000 = vmatprep.subr.mxu1 %v2145_v48 }
0x10c3   :  { %4001 = vmatpush3.msra.mxu1 %v2145_v48  ;;  %4002 = vmatprep.mubr.msk.f32.mxu1 %vm417_vm4, %v3483_v54 }
0x10c4   :  { %4272 = vmatprep.subr.bf16.mxu1 %v4373_v0 }
0x10c6   :  { %4003 = vmatmul.mubr.msk.f32.vlgmr.msra.gmra.mrb[30].mxu1 %vm417_vm4, %v3484_v43 }
0x10c7   :  { %4005 = vmatprep.mubr.msk.f32.mxu1 %vm417_vm4, %v3485_v62  ;;  %4274 = vmatpush3.bf16.msra.mxu1 %v4643_v60 }
0x10c8   :  { %4027 = vmatprep.subr.mxu1 %v4375_v3 }
0x10ca   :  { %4006 = vmatmul.mubr.msk.f32.gmra.mrb[32].mxu1 %vm417_vm4, %v3486_v63 }
0x10cb   :  { %4017 = vmatprep.mubr.msk.f32.mxu1 %vm4374_vm0, %v4375_v3 }
0x1195   :  { %v2299_v2 = vpop.f32.mrb[28].mxu1 }
0x1196   :  { %v2300_v4 = vadd.f32 %v2299_v2, %v2228_v1  ;;  %v3999_v5 = vpop.f32.mrb[29].mxu1 }
0x1198   :  { %v3482_v9 = vmul.f32 -1.442695, %v2300_v4 }
0x1199   :  { %v4004_v11 = vpop.f32.mrb[30].mxu1 }
0x119a   :  { %4361 = vpow2.f32 %v3482_v9  ;;  %v2420_v12 = vpop.f32.mrb[31].mxu1  ;;  %v2426_v55 = vadd.f32 %v4004_v11, %v2330_v27 }
0x119b   :  { %v2421_v13 = vadd.f32 %v2420_v12, %v2325_v8 }
0x119d   :  { %v4980_v14 = vpop.f32.mrb[32].mxu1  ;;  %4018 = vmatmul.mubr.msk.f32.vlgmr.msra.gmra.mrb[34].mxu1 %vm142_vm1, %v2421_v13 }
0x119e   :  { %v4983_v15 = vpop.f32.mrb[33].mxu1  ;;  %4029 = vmatprep.mubr.msk.f32.mxu1 %vm4374_vm0, %v4375_v3 }
0x11a4   :  { %v4362_v16 = vpop.eup %4361 }
0x11a5   :  { %v2306_v18 = vadd.f32 1.0, %v4362_v16 }
0x11a7   :  { %4363 = vrcp.f32 %v2306_v18 }
0x11b1   :  { %v4364_v19 = vpop.eup %4363 }
0x11b2   :  { %v2309_v22 = vmul.f32 %v4364_v19, %v2300_v4 }
0x11b4   :  { %v2310_v10 = vadd.f32 %v2309_v22, %v4856_v53 }
0x11b6   :  { %v4988_v24 = vmul.f32 0.70710677, %v2310_v10 }
0x11b8   :  { %4009 = vmatpush3.msra.mxu0 %v4988_v24 }
0x11b9   :  { %4011 = vmatmul.mubr.msk.f32.vlgmr.msra.gmra.mrb[32].mxu0 %vm417_vm4, %v3495_v25  ;;  %4275 = vmatprep.subr.bf16.mxu0 %v4373_v0 }
0x11ba   :  { %4277 = vmatpush3.bf16.msra.mxu0 %v4639_v59  ;;  %4024 = vmatprep.mubr.msk.f32.mxu0 %vm4374_vm0, %v4375_v3 }
0x11bb   :  { %4278 = vmatprep.subr.bf16.mxu0 %v4373_v0 }
0x11bd   :  { %4025 = vmatmul.mubr.msk.f32.vlgmr.msra.gmra.mrb[34].mxu0 %vm142_vm1, %v2426_v55 }
0x11be   :  { %4280 = vmatpush3.bf16.msra.mxu0 %v4683_v21  ;;  %4064 = vmatprep.mubr.msk.f32.mxu0 %vm4374_vm0, %v4375_v3 }
0x11bf   :  { %4281 = vmatprep.subr.bf16.mxu0 %v4373_v0 }
0x11c2   :  { %4283 = vmatpush3.bf16.msra.mxu0 %v4689_v23 }
0x11c3   :  { %4284 = vmatprep.subr.bf16.mxu0 %v4373_v0 }
0x11c6   :  { %4286 = vmatpush3.bf16.msra.mxu0 %v4699_v26 }
0x11c7   :  { %4287 = vmatprep.subr.bf16.mxu0 %v4373_v0 }
0x11ca   :  { %4289 = vmatpush3.bf16.msra.mxu0 %v4709_v29 }
0x11cb   :  { %4290 = vmatprep.subr.bf16.mxu0 %v4373_v0 }
0x11ce   :  { %4292 = vmatpush3.bf16.msra.mxu0 %v4721_v36 }
0x11cf   :  { %4293 = vmatprep.subr.bf16.mxu0 %v4373_v0 }
0x11d2   :  { %4295 = vmatpush3.bf16.msra.mxu0 %v4734_v40 }
0x11d3   :  { %4296 = vmatprep.subr.bf16.mxu0 %v4373_v0 }
0x11d6   :  { %4298 = vmatpush3.bf16.msra.mxu0 %v4747_v44 }
0x11d7   :  { %4299 = vmatprep.subr.bf16.mxu0 %v4373_v0 }
0x11da   :  { %4301 = vmatpush3.bf16.msra.mxu0 %v4760_v49 }
0x11db   :  { %4332 = vmatprep.subr.bf16.mxu0 %v4373_v0 }
0x1270   :  { %v2590_v53 = vpop.f32.mrb[34].mxu1 }
0x1271   :  { %v4019_v56 = vpop.f32.mrb[35].mxu1 }
0x128c   :  { %v2517_v57 = vpop.f32.mrb[32].mxu0 }
0x128d   :  { %v4012_v58 = vpop.f32.mrb[33].mxu0  ;;  %v2518_v28 = vadd.f32 %v2517_v57, %v2446_v7 }
0x1290   :  { %v2663_v30 = vpop.f32.mrb[34].mxu0 }
0x1291   :  { %v2664_v31 = vadd.f32 %v2663_v30, %v2518_v28  ;;  %v4026_v32 = vpop.f32.mrb[35].mxu0 }
0x1293   :  { %v2667_v33 = vmul.f32 %v2664_v31, %v2590_v53 }
0x1295   :  { %4028 = vmatpush3.msra.mxu1 %v2667_v33 }
0x1296   :  { %4030 = vmatmul.mubr.msk.f32.vlgmr.msra.gmra.mrb[36].mxu1 %vm417_vm4, %v4665_v17  ;;  %4302 = vmatprep.subr.bf16.mxu1 %v4373_v0 }
0x1297   :  { %4304 = vmatpush3.bf16.msra.mxu1 %v4643_v60  ;;  %4071 = vmatprep.mubr.msk.f32.mxu1 %vm4374_vm0, %v4375_v3 }
0x1298   :  { %4074 = vmatprep.subr.mxu1 %v4375_v3 }
0x1369   :  { %v2734_v34 = vpop.f32.mrb[36].mxu1 }
0x136a   :  { %v2738_v35 = vmul.f32 0.70710677, %v2734_v34  ;;  %v4031_v37 = vpop.f32.mrb[37].mxu1 }
0x136c   :  { %v2739_v38 = vsel %vm816_vm5, %v2738_v35, -inf }
0x136d   :  { %2740 = vmax.xlane.f32.xlu1 %v2739_v38 }
0x13fa   :  { %v2741_v39 = vpop.xlane.xlu1 %2740 }
0x13fb   :  { %v2742_v41 = vsub.f32 %v2738_v35, %v2741_v39 }
0x13fd   :  { %v2743_v42 = vmul.f32 1.442695, %v2742_v41 }
0x13ff   :  { %4365 = vpow2.f32 %v2743_v42 }
0x1409   :  { %v4366_v17 = vpop.eup %4365 }
0x140a   :  { %4065 = vmatmul.mubr.f32.vlgmr.msra.gmra.mrb[36].mxu0 %v4366_v17 }
0x140b   :  { %4334 = vmatpush3.bf16.msra.mxu0 %v4815_v20  ;;  %4125 = vmatprep.mubr.msk.f32.mxu0 %vm4374_vm0, %v4375_v3  ;;  %v2335_v20 = vpop.permute.xlu0 %2334 }
0x140c   :  { %4128 = vmatprep.subr.mxu0 %v4375_v3  ;;  %v2431_v52 = vadd.f32 %v4983_v15, %v2335_v20  ;;  %v3272_v15 = vld [vmem:[%s5112_s15] sm:$0xf] }
0x14dd   :  { %v2811_v60 = vpop.f32.mrb[36].mxu0 }
0x14de   :  { %4367 = vrcp.f32 %v2811_v60  ;;  %v4066_v46 = vpop.f32.mrb[37].mxu0 }
0x14e8   :  { %v4368_v47 = vpop.eup %4367 }
0x14e9   :  { %4072 = vmatmul.mubr.msk.f32.vlgmr.msra.gmra.mrb[38].mxu1 %vm142_vm1, %v4368_v47 }
0x14ea   :  { %4076 = vmatprep.mubr.msk.f32.mxu1 %vm4374_vm0, %v4375_v3 }
0x15bc   :  { %v2886_v48 = vpop.f32.mrb[38].mxu1 }
0x15bd   :  { %v2890_v50 = vmul.f32 %v4366_v17, %v2886_v48  ;;  %v4073_v51 = vpop.f32.mrb[39].mxu1 }
0x15bf   :  { %4075 = vmatpush3.msk.msra.mxu1 %vm816_vm5, %v2890_v50 }
0x15c0   :  { %4077 = vmatmul.mubr.msk.f32.vlgmr.msra.gmra.mrb[40].mxu1 %vm969_vm6, %v4778_v6  ;;  %4305 = vmatprep.subr.bf16.mxu1 %v4373_v0 }
0x15c1   :  { %4307 = vmatpush3.bf16.msra.mxu1 %v4639_v59  ;;  %4083 = vmatprep.mubr.msk.f32.mxu1 %vm4374_vm0, %v4375_v3 }
0x15c2   :  { %4308 = vmatprep.subr.bf16.mxu1 %v4373_v0 }
0x15c4   :  { %4084 = vmatmul.mubr.msk.f32.vlgmr.msra.gmra.mrb[42].mxu1 %vm142_vm1, %v2431_v52 }
0x15c5   :  { %4310 = vmatpush3.bf16.msra.mxu1 %v4683_v21  ;;  %4118 = vmatprep.mubr.msk.f32.mxu1 %vm4374_vm0, %v4375_v3 }
0x15c6   :  { %4311 = vmatprep.subr.bf16.mxu1 %v4373_v0 }
0x15c9   :  { %4313 = vmatpush3.bf16.msra.mxu1 %v4689_v23 }
0x15ca   :  { %4314 = vmatprep.subr.bf16.mxu1 %v4373_v0 }
0x15cd   :  { %4316 = vmatpush3.bf16.msra.mxu1 %v4699_v26 }
0x15ce   :  { %4317 = vmatprep.subr.bf16.mxu1 %v4373_v0 }
0x15d1   :  { %4319 = vmatpush3.bf16.msra.mxu1 %v4709_v29 }
0x15d2   :  { %4320 = vmatprep.subr.bf16.mxu1 %v4373_v0 }
0x15d5   :  { %4322 = vmatpush3.bf16.msra.mxu1 %v4721_v36  ;;  %v2340_v36 = vpop.permute.xlu0 %2339 }
0x15d6   :  { %4323 = vmatprep.subr.bf16.mxu1 %v4373_v0  ;;  %v2436_v54 = vadd.f32 %v4980_v14, %v2340_v36  ;;  %v3273_v14 = vld [vmem:[%s5111_s16] sm:$0xf] }
0x15d9   :  { %4325 = vmatpush3.bf16.msra.mxu1 %v4734_v40  ;;  %v3188_v62 = vpop.permute.xlu0 %3187 }
0x15da   :  { %4326 = vmatprep.subr.bf16.mxu1 %v4373_v0 }
0x15dd   :  { %4328 = vmatpush3.bf16.msra.mxu1 %v4747_v44 }
0x15de   :  { %4329 = vmatprep.subr.bf16.mxu1 %v4373_v0  ;;  %v3506_v0 = vld [vmem:[%s5109_s13 + $0x10] sm:$0xff] }
0x15e1   :  { %4331 = vmatpush3.bf16.msra.mxu1 %v4760_v49 }
0x1693   :  { %v2960_v59 = vpop.f32.mrb[40].mxu1 }
0x1694   :  { %v4078_v21 = vpop.f32.mrb[41].mxu1 }
0x1697   :  { %v3033_v23 = vpop.f32.mrb[42].mxu1 }
0x1698   :  { %v3034_v26 = vadd.f32 %v3033_v23, %v2518_v28  ;;  %v4085_v29 = vpop.f32.mrb[43].mxu1 }
0x169a   :  { %v3037_v6 = vmul.f32 %v3034_v26, %v2960_v59 }
0x169c   :  { %4119 = vmatmul.mubr.f32.vlgmr.msra.gmra.mrb[44].mxu1 %v3037_v6 }
0x176f   :  { %v3104_v61 = vpop.f32.mrb[44].mxu1 }
0x1770   :  { %v3105_v40 = vadd.f32 %v3104_v61, %v2436_v54  ;;  %v4120_v43 = vpop.f32.mrb[45].mxu1 }
0x1772   :  { %4126 = vmatmul.mubr.msk.f32.vlgmr.msra.gmra.mrb[38].mxu0 %vm142_vm1, %v3105_v40 }
0x1773   :  { %4130 = vmatprep.mubr.msk.f32.mxu0 %vm4374_vm0, %v4375_v3 }
0x1845   :  { %v3177_v44 = vpop.f32.mrb[38].mxu0 }
0x1846   :  { %v4127_v49 = vpop.f32.mrb[39].mxu0  ;;  %4129 = vmatpush3.msra.mxu0 %v3177_v44 }
0x1847   :  { %4131 = vmatmul.mubr.msk.f32.vlgmr.msra.gmra.mrb[40].mxu0 %vm417_vm4, %v3506_v0  ;;  %4133 = vmatprep.subr.mxu0 %v4375_v3 }
0x1848   :  { %4135 = vmatprep.mubr.msk.f32.mxu0 %vm4374_vm0, %v4375_v3 }
0x191a   :  { %v3259_v63 = vpop.f32.mrb[40].mxu0 }
0x191b   :  { %v3260_v1 = vadd.f32 %v3259_v63, %v3188_v62  ;;  %v4132_v2 = vpop.f32.mrb[41].mxu0 }
0x191d   :  { %v3509_v4 = vmul.f32 -1.442695, %v3260_v1 }
0x191f   :  { %4369 = vpow2.f32 %v3509_v4 }
0x1929   :  { %v4370_v5 = vpop.eup %4369 }
0x192a   :  { %v3266_v9 = vadd.f32 1.0, %v4370_v5 }
0x192c   :  { %4371 = vrcp.f32 %v3266_v9 }
0x1936   :  { %v4372_v11 = vpop.eup %4371 }
0x1937   :  { %v3269_v8 = vmul.f32 %v4372_v11, %v3260_v1 }
0x1939   :  { %v3270_v12 = vadd.f32 %v3269_v8, %v4988_v24  ;;  %v3424_v24 = vpop.permute.xlu0 %3423 }
0x193b   :  { %v3271_v13 = vmul.f32 0.70710677, %v3270_v12 }
0x193d   :  { %4134 = vmatpush3.msra.mxu0 %v3271_v13 }
0x193e   :  { %4136 = vmatmul.mubr.msk.f32.vlgmr.msra.gmra.mrb[42].mxu0 %vm417_vm4, %v3273_v14  ;;  %4138 = vmatprep.subr.mxu0 %v4375_v3 }
0x193f   :  { %4139 = vmatpush3.msra.mxu0 %v4589_v45  ;;  %4140 = vmatprep.mubr.msk.f32.mxu0 %vm4374_vm0, %v4375_v3 }
0x1942   :  { %4141 = vmatmul.mubr.msk.f32.vlgmr.msra.gmra.mrb[44].mxu0 %vm417_vm4, %v3272_v15 }
0x1a11   :  { %v3343_v16 = vpop.f32.mrb[42].mxu0 }
0x1a12   :  { %v4137_v18 = vpop.f32.mrb[43].mxu0 }
0x1a15   :  { %v3416_v19 = vpop.f32.mrb[44].mxu0 }
0x1a16   :  { %v3417_v22 = vadd.f32 %v3416_v19, %v3343_v16  ;;  %v4142_v10 = vpop.f32.mrb[45].mxu0 }
0x1a18   :  { %v3426_v25 = vadd.f32 %v3424_v24, %v3417_v22 }
0x1a1a   :  { %3427 = vst [vmem:[%s5113_s25] sm:$0xf] %v3426_v25 }

</bundles_post_ra>
